<compile_context>
chip_gen: v6e
topology: v6e:2x2x1
jax: 0.10.0
libtpu: 0.0.40
codegen_flags: <defaults>
</compile_context>

<pallas_src>
import jax
import jax.numpy as jnp
from jax import lax
from jax.experimental import pallas as pl
from jax.experimental.pallas import tpu as pltpu

EPS = 1e-5
_LANE = 128
_SUBLANE = 8


def _round_up(x, m):
    return ((x + m - 1) // m) * m


def _make_actor_kernel(batch, batch_tile, nb, use_bf16):
    """Build the 4-phase batch-tiled kernel (static shapes baked in)."""
    inv_b = 1.0 / batch                       # python float: NOT a captured jnp const
    needs_mask = (nb * batch_tile != batch)   # static
    last_rows = batch - (nb - 1) * batch_tile # static: valid rows in last tile
    mm_dtype = jnp.bfloat16 if use_bf16 else jnp.float32

    def kernel(s_ref,
               g0_ref, be0_ref,
               w1_ref, b1_ref, g1_ref, be1_ref,
               w2_ref, b2_ref, g2_ref, be2_ref,
               w3_ref, b3_ref,
               out_ref,
               s_cache, h1_cache, h2_cache,
               sum0, sumsq0, sum1, sumsq1, sum2, sumsq2):
        p = pl.program_id(0)     # phase (sequential dependency chain)
        i = pl.program_id(1)     # batch tile

        @pl.when(jnp.logical_and(p == 0, i == 0))
        def _init():
            for r in (sum0, sumsq0, sum1, sumsq1, sum2, sumsq2):
                r[...] = jnp.zeros_like(r)

        def accumulate(v, sum_ref, sumsq_ref):
            # Rows past the true batch size must not pollute the BN stats.
            # Only the LAST tile can contain padded rows.
            if needs_mask:
                @pl.when(i == nb - 1)
                def _masked():
                    rows = lax.broadcasted_iota(jnp.int32, (batch_tile, 1), 0)
                    m = (rows < last_rows).astype(jnp.float32)
                    vm = v * m
                    sum_ref[...] += jnp.sum(vm, axis=0, keepdims=True)
                    sumsq_ref[...] += jnp.sum(vm * vm, axis=0, keepdims=True)

                @pl.when(i != nb - 1)
                def _full():
                    sum_ref[...] += jnp.sum(v, axis=0, keepdims=True)
                    sumsq_ref[...] += jnp.sum(v * v, axis=0, keepdims=True)
            else:
                sum_ref[...] += jnp.sum(v, axis=0, keepdims=True)
                sumsq_ref[...] += jnp.sum(v * v, axis=0, keepdims=True)

        def finalize_bn(sum_ref, sumsq_ref, g_ref, be_ref):
            # Once per phase (i == 0): turn the fully-accumulated (sum, sumsq)
            # into fused BN (scale, bias), stored back IN PLACE so the
            # per-tile body is a single multiply-add.  var clamped >= 0.
            mean = sum_ref[...] * inv_b
            var = jnp.maximum(sumsq_ref[...] * inv_b - mean * mean, 0.0)
            scale = g_ref[...] * lax.rsqrt(var + EPS)          # rsqrt -> EUP
            sum_ref[...] = scale
            sumsq_ref[...] = be_ref[...] - mean * scale

        def mm(a, w_ref, b_ref):
            # bf16 MXU operands (native on every TPU gen), f32 accumulation.
            return (jnp.dot(a.astype(mm_dtype), w_ref[...],
                            preferred_element_type=jnp.float32) + b_ref[...])

        @pl.when(p == 0)
        def _phase0():
            x = s_ref[...].astype(jnp.float32)
            s_cache[i] = x
            # Padded state rows are zero -> contribute nothing; no mask needed.
            sum0[...] += jnp.sum(x, axis=0, keepdims=True)
            sumsq0[...] += jnp.sum(x * x, axis=0, keepdims=True)

        @pl.when(p == 1)
        def _phase1():
            @pl.when(i == 0)
            def _():
                finalize_bn(sum0, sumsq0, g0_ref, be0_ref)
            xn = s_cache[i] * sum0[...] + sumsq0[...]
            h1p = mm(xn, w1_ref, b1_ref)
            h1_cache[i] = h1p.astype(h1_cache.dtype)
            accumulate(h1p, sum1, sumsq1)

        @pl.when(p == 2)
        def _phase2():
            @pl.when(i == 0)
            def _():
                finalize_bn(sum1, sumsq1, g1_ref, be1_ref)
            h1 = jnp.maximum(
                h1_cache[i].astype(jnp.float32) * sum1[...] + sumsq1[...], 0.0)
            h2p = mm(h1, w2_ref, b2_ref)
            h2_cache[i] = h2p.astype(h2_cache.dtype)
            accumulate(h2p, sum2, sumsq2)

        @pl.when(p == 3)
        def _phase3():
            @pl.when(i == 0)
            def _():
                finalize_bn(sum2, sumsq2, g2_ref, be2_ref)
            h2 = jnp.maximum(
                h2_cache[i].astype(jnp.float32) * sum2[...] + sumsq2[...], 0.0)
            out_ref[...] = jnp.tanh(mm(h2, w3_ref, b3_ref)).astype(out_ref.dtype)

    return kernel


def actor_forward(state, params, *, batch_tile=None, use_bf16=True):
    """Pallas forward pass of the Actor.  state: (B, state_dim) f32."""
    f32 = jnp.float32
    B, S = state.shape
    L1 = params["w1"].shape[1]
    L2 = params["w2"].shape[1]
    A = params["w3"].shape[1]

    # Lane-dense padding of hidden / output feature dims to multiples of 128.
    L1p = _round_up(L1, _LANE)
    L2p = _round_up(L2, _LANE)
    Ap = _round_up(A, _LANE)

    # Batch tiling (8-aligned; default 1024 rows per tile — multiple of 256 so
    # large batches fill the 256-wide MXU on v6e/v7x).
    if batch_tile is None:
        batch_tile = 1024
    TB = _round_up(min(batch_tile, _round_up(B, _SUBLANE)), _SUBLANE)
    Bp = _round_up(B, TB)
    nb = Bp // TB

    mmd = jnp.bfloat16 if use_bf16 else f32

    # Activation caches stay f32 unless they would press on v7x's 64 MiB VMEM,
    # in which case fall back to bf16 caching.
    cache_f32_bytes = Bp * (L1p + L2p) * 4
    cache_dt = f32 if (not use_bf16 or cache_f32_bytes <= (24 << 20)) else jnp.bfloat16
    # TODO(synk): for batches too large to cache even in bf16, fall back to a
    # recompute schedule instead of activation caching.

    def pad2(a, rows, cols, dtype=f32):
        a = a.astype(dtype)
        return jnp.pad(a, ((0, rows - a.shape[0]), (0, cols - a.shape[1])))

    s_p = pad2(state, Bp, S)
    g0, be0 = params["g0"].astype(f32), params["be0"].astype(f32)
    w1 = pad2(params["w1"], S, L1p, mmd)
    b1 = pad2(params["b1"], 1, L1p)
    g1 = pad2(params["g1"], 1, L1p)
    be1 = pad2(params["be1"], 1, L1p)
    w2 = pad2(params["w2"], L1p, L2p, mmd)
    b2 = pad2(params["b2"], 1, L2p)
    g2 = pad2(params["g2"], 1, L2p)
    be2 = pad2(params["be2"], 1, L2p)
    w3 = pad2(params["w3"], L2p, Ap, mmd)
    b3 = pad2(params["b3"], 1, Ap)

    # State is DMA'd from HBM only during phase 0 (VMEM-cached afterwards,
    # index pinned to the last-fetched block => no re-fetch); the output is
    # written back to HBM only during phase 3 (index pinned to block 0 before).
    state_map = lambda p, i: (jnp.where(p == 0, i, nb - 1), 0)
    out_map = lambda p, i: (jnp.where(p == 3, i, 0), 0)
    const = lambda p, i: (0, 0)     # VMEM-resident weights & BN params

    in_specs = [
        pl.BlockSpec((TB, S), state_map),
        pl.BlockSpec((1, S), const), pl.BlockSpec((1, S), const),
        pl.BlockSpec((S, L1p), const), pl.BlockSpec((1, L1p), const),
        pl.BlockSpec((1, L1p), const), pl.BlockSpec((1, L1p), const),
        pl.BlockSpec((L1p, L2p), const), pl.BlockSpec((1, L2p), const),
        pl.BlockSpec((1, L2p), const), pl.BlockSpec((1, L2p), const),
        pl.BlockSpec((L2p, Ap), const), pl.BlockSpec((1, Ap), const),
    ]
    out_specs = pl.BlockSpec((TB, Ap), out_map)

    scratch_shapes = [
        pltpu.VMEM((nb, TB, S), f32),          # cached state
        pltpu.VMEM((nb, TB, L1p), cache_dt),   # cached h1_pre
        pltpu.VMEM((nb, TB, L2p), cache_dt),   # cached h2_pre
        pltpu.VMEM((1, S), f32), pltpu.VMEM((1, S), f32),       # BN0 stats -> scale/bias
        pltpu.VMEM((1, L1p), f32), pltpu.VMEM((1, L1p), f32),   # BN1
        pltpu.VMEM((1, L2p), f32), pltpu.VMEM((1, L2p), f32),   # BN2
    ]

    w_item = 2 if use_bf16 else 4
    cache_item = 2 if cache_dt == jnp.bfloat16 else 4
    # Scoped-VMEM budget sized from actual residency, capped below v7x's
    # 64 MiB physical VMEM.
    resident = (Bp * S * 4 + Bp * (L1p + L2p) * cache_item
                + 2 * (S * L1p + L1p * L2p + L2p * Ap) * w_item
                + 2 * TB * (S + Ap) * 4)
    vmem_limit = int(min(max(resident + (8 << 20), 32 << 20), 56 << 20))

    # Advisory cost estimate: state read 1x, output written 1x, each matmul once.
    flops = 2 * Bp * (S * L1p + L1p * L2p + L2p * Ap)
    transcendentals = Bp * Ap + (S + L1p + L2p)
    bytes_accessed = (Bp * S * 4 + Bp * Ap * 4
                      + (S * L1p + L1p * L2p + L2p * Ap) * w_item
                      + 4 * (2 * S + 3 * L1p + 3 * L2p + Ap))

    kernel = _make_actor_kernel(B, TB, nb, use_bf16)
    out = pl.pallas_call(
        kernel,
        out_shape=jax.ShapeDtypeStruct((Bp, Ap), f32),
        grid_spec=pltpu.PrefetchScalarGridSpec(
            num_scalar_prefetch=0,
            grid=(4, nb),                  # (phase, batch tile); phase outermost
            in_specs=in_specs,
            out_specs=out_specs,
            scratch_shapes=scratch_shapes),
        compiler_params=pltpu.CompilerParams(
            # Both axes are sequential: the phase axis is a dependency chain
            # and the batch axis carries the cross-tile BN-stats reduction.
            # TODO(synk): on v7x, split the batch across the 2 TensorCores
            # (core_map + per-core partial sums + barrier) for up to ~2x.
            dimension_semantics=("arbitrary", "arbitrary"),
            vmem_limit_bytes=vmem_limit),
        cost_estimate=pl.CostEstimate(
            flops=int(flops),
            transcendentals=int(transcendentals),
            bytes_accessed=int(bytes_accessed)),
    )(s_p, g0, be0, w1, b1, g1, be1, w2, b2, g2, be2, w3, b3)

    return out[:B, :A]


def init_params(key, state_dim, layer1, layer2, action_dim):
    """Deterministic init mimicking torch.nn.Linear default (uniform +-1/sqrt(fan_in));
    BatchNorm gammas=1, betas=0 (torch defaults).  Weights stored (in, out)."""
    ks = jax.random.split(key, 6)

    def lin(kw, kb, fan_in, fan_out):
        bound = 1.0 / jnp.sqrt(fan_in)
        w = jax.random.uniform(kw, (fan_in, fan_out), jnp.float32, -bound, bound)
        b = jax.random.uniform(kb, (1, fan_out), jnp.float32, -bound, bound)
        return w, b

    w1, b1 = lin(ks[0], ks[1], state_dim, layer1)
    w2, b2 = lin(ks[2], ks[3], layer1, layer2)
    w3, b3 = lin(ks[4], ks[5], layer2, action_dim)
    return {
        "g0": jnp.ones((1, state_dim), jnp.float32),
        "be0": jnp.zeros((1, state_dim), jnp.float32),
        "w1": w1, "b1": b1,
        "g1": jnp.ones((1, layer1), jnp.float32),
        "be1": jnp.zeros((1, layer1), jnp.float32),
        "w2": w2, "b2": b2,
        "g2": jnp.ones((1, layer2), jnp.float32),
        "be2": jnp.zeros((1, layer2), jnp.float32),
        "w3": w3, "b3": b3,
    }


def actor_reference(state, p, use_bf16=True):
    """Pure-JAX reference: same math as the torch module in training mode,
    with the same fused single-pass variance (clamped) and matmul-operand
    precision.  NOTE: the bf16 matmul-operand cast is a deliberate accuracy
    deviation from torch's f32 Linear."""
    mmd = jnp.bfloat16 if use_bf16 else jnp.float32

    def bn(x, g, be):
        mean = jnp.mean(x, axis=0, keepdims=True)
        var = jnp.maximum(jnp.mean(x * x, axis=0, keepdims=True) - mean * mean, 0.0)
        scale = g * lax.rsqrt(var + EPS)
        return x * scale + (be - mean * scale)

    def mm(x, w):
        return jnp.dot(x.astype(mmd), w.astype(mmd),
                       preferred_element_type=jnp.float32)

    s = bn(state, p["g0"], p["be0"])
    h1 = jnp.maximum(bn(mm(s, p["w1"]) + p["b1"], p["g1"], p["be1"]), 0.0)
    h2 = jnp.maximum(bn(mm(h1, p["w2"]) + p["b2"], p["g2"], p["be2"]), 0.0)
    return jnp.tanh(mm(h2, p["w3"]) + p["b3"])


if __name__ == "__main__":
    # Small shapes consistent with the module: Actor(state_shape=16,
    # action_shape=4, layer1=64, layer2=32), batch of 40 states.
    # batch_tile=16 exercises the multi-tile grid + last-tile masking
    # (40 rows -> 3 tiles of 16, last 8 rows masked out of the BN stats).
    B, STATE, L1, L2, ACT = 40, 16, 64, 32, 4

    key = jax.random.PRNGKey(0)
    k_state, k_params = jax.random.split(key)
    state = jax.random.normal(k_state, (B, STATE), jnp.float32)
    params = init_params(k_params, STATE, L1, L2, ACT)

    fwd = jax.jit(actor_forward, static_argnames=("batch_tile", "use_bf16"))

    # bf16 MXU operands (fast path on every TPU gen), f32 accumulation +
    # f32 elementwise.  Both kernel and reference round operands to bf16, so
    # the comparison is tight.
    out_bf16 = jax.block_until_ready(fwd(state, params, batch_tile=16, use_bf16=True))
    ref_bf16 = actor_reference(state, params, use_bf16=True)
    assert out_bf16.shape == (B, ACT)
    assert jnp.allclose(out_bf16, ref_bf16, atol=5e-3, rtol=5e-3), "bf16 path mismatch"

    # f32-operand path; looser tolerance absorbs MXU-pass vs XLA-default f32
    # matmul precision differences.
    out_f32 = jax.block_until_ready(fwd(state, params, batch_tile=16, use_bf16=False))
    ref_f32 = actor_reference(state, params, use_bf16=False)
    assert jnp.allclose(out_f32, ref_f32, atol=2e-2, rtol=2e-2), "f32 path mismatch"

    print("KERNEL_OK")
</pallas_src>

<mosaic_0001>
module attributes {stable_mosaic.version = 11 : i64} {
  func.func @kernel(%arg0: i32, %arg1: i32, %arg2: memref<16x16xf32, #tpu.memory_space<vmem>>, %arg3: memref<1x16xf32, #tpu.memory_space<vmem>>, %arg4: memref<1x16xf32, #tpu.memory_space<vmem>>, %arg5: memref<16x128xbf16, #tpu.memory_space<vmem>>, %arg6: memref<1x128xf32, #tpu.memory_space<vmem>>, %arg7: memref<1x128xf32, #tpu.memory_space<vmem>>, %arg8: memref<1x128xf32, #tpu.memory_space<vmem>>, %arg9: memref<128x128xbf16, #tpu.memory_space<vmem>>, %arg10: memref<1x128xf32, #tpu.memory_space<vmem>>, %arg11: memref<1x128xf32, #tpu.memory_space<vmem>>, %arg12: memref<1x128xf32, #tpu.memory_space<vmem>>, %arg13: memref<128x128xbf16, #tpu.memory_space<vmem>>, %arg14: memref<1x128xf32, #tpu.memory_space<vmem>>, %arg15: memref<16x128xf32, #tpu.memory_space<vmem>>, %arg16: memref<3x16x16xf32, #tpu.memory_space<vmem>>, %arg17: memref<3x16x128xf32, #tpu.memory_space<vmem>>, %arg18: memref<3x16x128xf32, #tpu.memory_space<vmem>>, %arg19: memref<1x16xf32, #tpu.memory_space<vmem>>, %arg20: memref<1x16xf32, #tpu.memory_space<vmem>>, %arg21: memref<1x128xf32, #tpu.memory_space<vmem>>, %arg22: memref<1x128xf32, #tpu.memory_space<vmem>>, %arg23: memref<1x128xf32, #tpu.memory_space<vmem>>, %arg24: memref<1x128xf32, #tpu.memory_space<vmem>>) attributes {dimension_semantics = [#tpu.dimension_semantics<arbitrary>, #tpu.dimension_semantics<arbitrary>], iteration_bounds = array<i64: 4, 3>, scalar_prefetch = 0 : i64, scratch_operands = 9 : i64, tpu.core_type = #tpu.core_type<tc>, window_params = [{transform_indices = @transform_0, window_bounds = array<i64: 16, 16>}, {pipeline_mode = #tpu.pipeline_mode<synchronous>, transform_indices = @transform_1, window_bounds = array<i64: 1, 16>}, {pipeline_mode = #tpu.pipeline_mode<synchronous>, transform_indices = @transform_2, window_bounds = array<i64: 1, 16>}, {pipeline_mode = #tpu.pipeline_mode<synchronous>, transform_indices = @transform_3, window_bounds = array<i64: 16, 128>}, {pipeline_mode = #tpu.pipeline_mode<synchronous>, transform_indices = @transform_4, window_bounds = array<i64: 1, 128>}, {pipeline_mode = #tpu.pipeline_mode<synchronous>, transform_indices = @transform_5, window_bounds = array<i64: 1, 128>}, {pipeline_mode = #tpu.pipeline_mode<synchronous>, transform_indices = @transform_6, window_bounds = array<i64: 1, 128>}, {pipeline_mode = #tpu.pipeline_mode<synchronous>, transform_indices = @transform_7, window_bounds = array<i64: 128, 128>}, {pipeline_mode = #tpu.pipeline_mode<synchronous>, transform_indices = @transform_8, window_bounds = array<i64: 1, 128>}, {pipeline_mode = #tpu.pipeline_mode<synchronous>, transform_indices = @transform_9, window_bounds = array<i64: 1, 128>}, {pipeline_mode = #tpu.pipeline_mode<synchronous>, transform_indices = @transform_10, window_bounds = array<i64: 1, 128>}, {pipeline_mode = #tpu.pipeline_mode<synchronous>, transform_indices = @transform_11, window_bounds = array<i64: 128, 128>}, {pipeline_mode = #tpu.pipeline_mode<synchronous>, transform_indices = @transform_12, window_bounds = array<i64: 1, 128>}, {transform_indices = @transform_13, window_bounds = array<i64: 16, 128>}]} {
    %c0_i32 = arith.constant 0 : i32
    %0 = arith.cmpi eq, %arg0, %c0_i32 : i32
    %c0_i32_0 = arith.constant 0 : i32
    %1 = arith.cmpi eq, %arg1, %c0_i32_0 : i32
    %2 = arith.andi %0, %1 : i1
    %3 = arith.extui %2 : i1 to i32
    %c0_i32_1 = arith.constant 0 : i32
    %4 = arith.cmpi ne, %3, %c0_i32_1 : i32
    scf.if %4 {
      %cst = arith.constant 0.000000e+00 : f32
      %17 = vector.broadcast %cst : f32 to vector<1x16xf32>
      %c0 = arith.constant 0 : index
      %c0_7 = arith.constant 0 : index
      %18 = vector.load %arg19[%c0, %c0_7] : memref<1x16xf32, #tpu.memory_space<vmem>>, vector<1x16xf32>
      tpu.vector_store %arg19[%c0, %c0_7], %17 {strides = array<i32>} : memref<1x16xf32, #tpu.memory_space<vmem>>, vector<1x16xf32>,
      %cst_8 = arith.constant 0.000000e+00 : f32
      %19 = vector.broadcast %cst_8 : f32 to vector<1x16xf32>
      %c0_9 = arith.constant 0 : index
      %c0_10 = arith.constant 0 : index
      %20 = vector.load %arg20[%c0_9, %c0_10] : memref<1x16xf32, #tpu.memory_space<vmem>>, vector<1x16xf32>
      tpu.vector_store %arg20[%c0_9, %c0_10], %19 {strides = array<i32>} : memref<1x16xf32, #tpu.memory_space<vmem>>, vector<1x16xf32>,
      %cst_11 = arith.constant 0.000000e+00 : f32
      %21 = vector.broadcast %cst_11 : f32 to vector<1x128xf32>
      %c0_12 = arith.constant 0 : index
      %c0_13 = arith.constant 0 : index
      %22 = vector.load %arg21[%c0_12, %c0_13] : memref<1x128xf32, #tpu.memory_space<vmem>>, vector<1x128xf32>
      tpu.vector_store %arg21[%c0_12, %c0_13], %21 {strides = array<i32>} : memref<1x128xf32, #tpu.memory_space<vmem>>, vector<1x128xf32>,
      %cst_14 = arith.constant 0.000000e+00 : f32
      %23 = vector.broadcast %cst_14 : f32 to vector<1x128xf32>
      %c0_15 = arith.constant 0 : index
      %c0_16 = arith.constant 0 : index
      %24 = vector.load %arg22[%c0_15, %c0_16] : memref<1x128xf32, #tpu.memory_space<vmem>>, vector<1x128xf32>
      tpu.vector_store %arg22[%c0_15, %c0_16], %23 {strides = array<i32>} : memref<1x128xf32, #tpu.memory_space<vmem>>, vector<1x128xf32>,
      %cst_17 = arith.constant 0.000000e+00 : f32
      %25 = vector.broadcast %cst_17 : f32 to vector<1x128xf32>
      %c0_18 = arith.constant 0 : index
      %c0_19 = arith.constant 0 : index
      %26 = vector.load %arg23[%c0_18, %c0_19] : memref<1x128xf32, #tpu.memory_space<vmem>>, vector<1x128xf32>
      tpu.vector_store %arg23[%c0_18, %c0_19], %25 {strides = array<i32>} : memref<1x128xf32, #tpu.memory_space<vmem>>, vector<1x128xf32>,
      %cst_20 = arith.constant 0.000000e+00 : f32
      %27 = vector.broadcast %cst_20 : f32 to vector<1x128xf32>
      %c0_21 = arith.constant 0 : index
      %c0_22 = arith.constant 0 : index
      %28 = vector.load %arg24[%c0_21, %c0_22] : memref<1x128xf32, #tpu.memory_space<vmem>>, vector<1x128xf32>
      tpu.vector_store %arg24[%c0_21, %c0_22], %27 {strides = array<i32>} : memref<1x128xf32, #tpu.memory_space<vmem>>, vector<1x128xf32>,
    } else {
    }
    %c0_i32_2 = arith.constant 0 : i32
    %5 = arith.cmpi eq, %arg0, %c0_i32_2 : i32
    %6 = arith.extui %5 : i1 to i32
    %c0_i32_3 = arith.constant 0 : i32
    %7 = arith.cmpi ne, %6, %c0_i32_3 : i32
    scf.if %7 {
      %c0 = arith.constant 0 : index
      %c0_7 = arith.constant 0 : index
      %17 = vector.load %arg2[%c0, %c0_7] : memref<16x16xf32, #tpu.memory_space<vmem>>, vector<16x16xf32>
      %18 = arith.index_cast %arg1 : i32 to index
      %c0_8 = arith.constant 0 : index
      %c0_9 = arith.constant 0 : index
      %19 = vector.load %arg16[%18, %c0_8, %c0_9] : memref<3x16x16xf32, #tpu.memory_space<vmem>>, vector<1x16x16xf32>
      %20 = vector.shape_cast %19 : vector<1x16x16xf32> to vector<16x16xf32>
      %21 = vector.shape_cast %17 : vector<16x16xf32> to vector<1x16x16xf32>
      tpu.vector_store %arg16[%18, %c0_8, %c0_9], %21 {strides = array<i32>} : memref<3x16x16xf32, #tpu.memory_space<vmem>>, vector<1x16x16xf32>,
      %c0_10 = arith.constant 0 : index
      %c0_11 = arith.constant 0 : index
      %22 = vector.load %arg19[%c0_10, %c0_11] : memref<1x16xf32, #tpu.memory_space<vmem>>, vector<1x16xf32>
      %cst = arith.constant dense<0.000000e+00> : vector<16xf32>
      %23 = vector.multi_reduction <add>, %17, %cst [0] : vector<16x16xf32> to vector<16xf32>
      %24 = vector.shape_cast %23 : vector<16xf32> to vector<1x16xf32>
      %25 = arith.addf %22, %24 : vector<1x16xf32>
      %c0_12 = arith.constant 0 : index
      %c0_13 = arith.constant 0 : index
      %26 = vector.load %arg19[%c0_12, %c0_13] : memref<1x16xf32, #tpu.memory_space<vmem>>, vector<1x16xf32>
      tpu.vector_store %arg19[%c0_12, %c0_13], %25 {strides = array<i32>} : memref<1x16xf32, #tpu.memory_space<vmem>>, vector<1x16xf32>,
      %c0_14 = arith.constant 0 : index
      %c0_15 = arith.constant 0 : index
      %27 = vector.load %arg20[%c0_14, %c0_15] : memref<1x16xf32, #tpu.memory_space<vmem>>, vector<1x16xf32>
      %28 = arith.mulf %17, %17 : vector<16x16xf32>
      %cst_16 = arith.constant dense<0.000000e+00> : vector<16xf32>
      %29 = vector.multi_reduction <add>, %28, %cst_16 [0] : vector<16x16xf32> to vector<16xf32>
      %30 = vector.shape_cast %29 : vector<16xf32> to vector<1x16xf32>
      %31 = arith.addf %27, %30 : vector<1x16xf32>
      %c0_17 = arith.constant 0 : index
      %c0_18 = arith.constant 0 : index
      %32 = vector.load %arg20[%c0_17, %c0_18] : memref<1x16xf32, #tpu.memory_space<vmem>>, vector<1x16xf32>
      tpu.vector_store %arg20[%c0_17, %c0_18], %31 {strides = array<i32>} : memref<1x16xf32, #tpu.memory_space<vmem>>, vector<1x16xf32>,
    } else {
    }
    %c1_i32 = arith.constant 1 : i32
    %8 = arith.cmpi eq, %arg0, %c1_i32 : i32
    %9 = arith.extui %8 : i1 to i32
    %c0_i32_4 = arith.constant 0 : i32
    %10 = arith.cmpi ne, %9, %c0_i32_4 : i32
    scf.if %10 {
      %c0_i32_7 = arith.constant 0 : i32
      %17 = arith.cmpi eq, %arg1, %c0_i32_7 : i32
      %18 = arith.extui %17 : i1 to i32
      %c0_i32_8 = arith.constant 0 : i32
      %19 = arith.cmpi ne, %18, %c0_i32_8 : i32
      scf.if %19 {
        %c0_24 = arith.constant 0 : index
        %c0_25 = arith.constant 0 : index
        %45 = vector.load %arg19[%c0_24, %c0_25] : memref<1x16xf32, #tpu.memory_space<vmem>>, vector<1x16xf32>
        %cst_26 = arith.constant 2.500000e-02 : f32
        %46 = vector.broadcast %cst_26 : f32 to vector<1x16xf32>
        %47 = arith.mulf %45, %46 : vector<1x16xf32>
        %c0_27 = arith.constant 0 : index
        %c0_28 = arith.constant 0 : index
        %48 = vector.load %arg20[%c0_27, %c0_28] : memref<1x16xf32, #tpu.memory_space<vmem>>, vector<1x16xf32>
        %cst_29 = arith.constant 2.500000e-02 : f32
        %49 = vector.broadcast %cst_29 : f32 to vector<1x16xf32>
        %50 = arith.mulf %48, %49 : vector<1x16xf32>
        %51 = arith.mulf %47, %47 : vector<1x16xf32>
        %52 = arith.subf %50, %51 : vector<1x16xf32>
        %cst_30 = arith.constant 0.000000e+00 : f32
        %53 = vector.broadcast %cst_30 : f32 to vector<1x16xf32>
        %54 = arith.maximumf %52, %53 : vector<1x16xf32>
        %c0_31 = arith.constant 0 : index
        %c0_32 = arith.constant 0 : index
        %55 = vector.load %arg3[%c0_31, %c0_32] : memref<1x16xf32, #tpu.memory_space<vmem>>, vector<1x16xf32>
        %cst_33 = arith.constant 9.99999974E-6 : f32
        %56 = vector.broadcast %cst_33 : f32 to vector<1x16xf32>
        %57 = arith.addf %54, %56 : vector<1x16xf32>
        %58 = math.rsqrt %57 : vector<1x16xf32>
        %59 = arith.mulf %55, %58 : vector<1x16xf32>
        %c0_34 = arith.constant 0 : index
        %c0_35 = arith.constant 0 : index
        %60 = vector.load %arg19[%c0_34, %c0_35] : memref<1x16xf32, #tpu.memory_space<vmem>>, vector<1x16xf32>
        tpu.vector_store %arg19[%c0_34, %c0_35], %59 {strides = array<i32>} : memref<1x16xf32, #tpu.memory_space<vmem>>, vector<1x16xf32>,
        %c0_36 = arith.constant 0 : index
        %c0_37 = arith.constant 0 : index
        %61 = vector.load %arg4[%c0_36, %c0_37] : memref<1x16xf32, #tpu.memory_space<vmem>>, vector<1x16xf32>
        %62 = arith.mulf %47, %59 : vector<1x16xf32>
        %63 = arith.subf %61, %62 : vector<1x16xf32>
        %c0_38 = arith.constant 0 : index
        %c0_39 = arith.constant 0 : index
        %64 = vector.load %arg20[%c0_38, %c0_39] : memref<1x16xf32, #tpu.memory_space<vmem>>, vector<1x16xf32>
        tpu.vector_store %arg20[%c0_38, %c0_39], %63 {strides = array<i32>} : memref<1x16xf32, #tpu.memory_space<vmem>>, vector<1x16xf32>,
      } else {
      }
      %20 = arith.index_cast %arg1 : i32 to index
      %c0 = arith.constant 0 : index
      %c0_9 = arith.constant 0 : index
      %21 = vector.load %arg16[%20, %c0, %c0_9] : memref<3x16x16xf32, #tpu.memory_space<vmem>>, vector<1x16x16xf32>
      %22 = vector.shape_cast %21 : vector<1x16x16xf32> to vector<16x16xf32>
      %c0_10 = arith.constant 0 : index
      %c0_11 = arith.constant 0 : index
      %23 = vector.load %arg19[%c0_10, %c0_11] : memref<1x16xf32, #tpu.memory_space<vmem>>, vector<1x16xf32>
      %24 = vector.broadcast %23 : vector<1x16xf32> to vector<16x16xf32>
      %25 = arith.mulf %22, %24 : vector<16x16xf32>
      %c0_12 = arith.constant 0 : index
      %c0_13 = arith.constant 0 : index
      %26 = vector.load %arg20[%c0_12, %c0_13] : memref<1x16xf32, #tpu.memory_space<vmem>>, vector<1x16xf32>
      %27 = vector.broadcast %26 : vector<1x16xf32> to vector<16x16xf32>
      %28 = arith.addf %25, %27 : vector<16x16xf32>
      %29 = arith.truncf %28 : vector<16x16xf32> to vector<16x16xbf16>
      %c0_14 = arith.constant 0 : index
      %c0_15 = arith.constant 0 : index
      %30 = vector.load %arg5[%c0_14, %c0_15] : memref<16x128xbf16, #tpu.memory_space<vmem>>, vector<16x128xbf16>
      %cst = arith.constant dense<0.000000e+00> : vector<16x128xf32>
      %31 = tpu.matmul %29, %30, %cst {dimension_numbers = #tpu.dot_dimension_numbers<[1], [0], [0], [1], [0, 0, 1, 1], [], []>} : vector<16x16xbf16>, vector<16x128xbf16>, vector<16x128xf32> -> vector<16x128xf32>
      %c0_16 = arith.constant 0 : index
      %c0_17 = arith.constant 0 : index
      %32 = vector.load %arg6[%c0_16, %c0_17] : memref<1x128xf32, #tpu.memory_space<vmem>>, vector<1x128xf32>
      %33 = vector.broadcast %32 : vector<1x128xf32> to vector<16x128xf32>
      %34 = arith.addf %31, %33 : vector<16x128xf32>
      %35 = arith.index_cast %arg1 : i32 to index
      %c0_18 = arith.constant 0 : index
      %c0_19 = arith.constant 0 : index
      %36 = vector.load %arg17[%35, %c0_18, %c0_19] : memref<3x16x128xf32, #tpu.memory_space<vmem>>, vector<1x16x128xf32>
      %37 = vector.shape_cast %36 : vector<1x16x128xf32> to vector<16x128xf32>
      %38 = vector.shape_cast %34 : vector<16x128xf32> to vector<1x16x128xf32>
      tpu.vector_store %arg17[%35, %c0_18, %c0_19], %38 {strides = array<i32>} : memref<3x16x128xf32, #tpu.memory_space<vmem>>, vector<1x16x128xf32>,
      %c2_i32_20 = arith.constant 2 : i32
      %39 = arith.cmpi eq, %arg1, %c2_i32_20 : i32
      %40 = arith.extui %39 : i1 to i32
      %c0_i32_21 = arith.constant 0 : i32
      %41 = arith.cmpi ne, %40, %c0_i32_21 : i32
      scf.if %41 {
        %45 = tpu.iota {dimensions = array<i32: 0>} : vector<16x1xi32>
        %c8_i32 = arith.constant 8 : i32
        %46 = vector.broadcast %c8_i32 : i32 to vector<16x1xi32>
        %47 = arith.cmpi slt, %45, %46 : vector<16x1xi32>
        %48 = arith.extui %47 : vector<16x1xi1> to vector<16x1xi32>
        %49 = arith.sitofp %48 : vector<16x1xi32> to vector<16x1xf32>
        %50 = vector.broadcast %49 : vector<16x1xf32> to vector<16x128xf32>
        %51 = arith.mulf %34, %50 : vector<16x128xf32>
        %c0_24 = arith.constant 0 : index
        %c0_25 = arith.constant 0 : index
        %52 = vector.load %arg21[%c0_24, %c0_25] : memref<1x128xf32, #tpu.memory_space<vmem>>, vector<1x128xf32>
        %cst_26 = arith.constant dense<0.000000e+00> : vector<128xf32>
        %53 = vector.multi_reduction <add>, %51, %cst_26 [0] : vector<16x128xf32> to vector<128xf32>
        %54 = vector.shape_cast %53 : vector<128xf32> to vector<1x128xf32>
        %55 = arith.addf %52, %54 : vector<1x128xf32>
        %c0_27 = arith.constant 0 : index
        %c0_28 = arith.constant 0 : index
        %56 = vector.load %arg21[%c0_27, %c0_28] : memref<1x128xf32, #tpu.memory_space<vmem>>, vector<1x128xf32>
        tpu.vector_store %arg21[%c0_27, %c0_28], %55 {strides = array<i32>} : memref<1x128xf32, #tpu.memory_space<vmem>>, vector<1x128xf32>,
        %c0_29 = arith.constant 0 : index
        %c0_30 = arith.constant 0 : index
        %57 = vector.load %arg22[%c0_29, %c0_30] : memref<1x128xf32, #tpu.memory_space<vmem>>, vector<1x128xf32>
        %58 = arith.mulf %51, %51 : vector<16x128xf32>
        %cst_31 = arith.constant dense<0.000000e+00> : vector<128xf32>
        %59 = vector.multi_reduction <add>, %58, %cst_31 [0] : vector<16x128xf32> to vector<128xf32>
        %60 = vector.shape_cast %59 : vector<128xf32> to vector<1x128xf32>
        %61 = arith.addf %57, %60 : vector<1x128xf32>
        %c0_32 = arith.constant 0 : index
        %c0_33 = arith.constant 0 : index
        %62 = vector.load %arg22[%c0_32, %c0_33] : memref<1x128xf32, #tpu.memory_space<vmem>>, vector<1x128xf32>
        tpu.vector_store %arg22[%c0_32, %c0_33], %61 {strides = array<i32>} : memref<1x128xf32, #tpu.memory_space<vmem>>, vector<1x128xf32>,
      } else {
      }
      %c2_i32_22 = arith.constant 2 : i32
      %42 = arith.cmpi ne, %arg1, %c2_i32_22 : i32
      %43 = arith.extui %42 : i1 to i32
      %c0_i32_23 = arith.constant 0 : i32
      %44 = arith.cmpi ne, %43, %c0_i32_23 : i32
      scf.if %44 {
        %c0_24 = arith.constant 0 : index
        %c0_25 = arith.constant 0 : index
        %45 = vector.load %arg21[%c0_24, %c0_25] : memref<1x128xf32, #tpu.memory_space<vmem>>, vector<1x128xf32>
        %cst_26 = arith.constant dense<0.000000e+00> : vector<128xf32>
        %46 = vector.multi_reduction <add>, %34, %cst_26 [0] : vector<16x128xf32> to vector<128xf32>
        %47 = vector.shape_cast %46 : vector<128xf32> to vector<1x128xf32>
        %48 = arith.addf %45, %47 : vector<1x128xf32>
        %c0_27 = arith.constant 0 : index
        %c0_28 = arith.constant 0 : index
        %49 = vector.load %arg21[%c0_27, %c0_28] : memref<1x128xf32, #tpu.memory_space<vmem>>, vector<1x128xf32>
        tpu.vector_store %arg21[%c0_27, %c0_28], %48 {strides = array<i32>} : memref<1x128xf32, #tpu.memory_space<vmem>>, vector<1x128xf32>,
        %c0_29 = arith.constant 0 : index
        %c0_30 = arith.constant 0 : index
        %50 = vector.load %arg22[%c0_29, %c0_30] : memref<1x128xf32, #tpu.memory_space<vmem>>, vector<1x128xf32>
        %51 = arith.mulf %34, %34 : vector<16x128xf32>
        %cst_31 = arith.constant dense<0.000000e+00> : vector<128xf32>
        %52 = vector.multi_reduction <add>, %51, %cst_31 [0] : vector<16x128xf32> to vector<128xf32>
        %53 = vector.shape_cast %52 : vector<128xf32> to vector<1x128xf32>
        %54 = arith.addf %50, %53 : vector<1x128xf32>
        %c0_32 = arith.constant 0 : index
        %c0_33 = arith.constant 0 : index
        %55 = vector.load %arg22[%c0_32, %c0_33] : memref<1x128xf32, #tpu.memory_space<vmem>>, vector<1x128xf32>
        tpu.vector_store %arg22[%c0_32, %c0_33], %54 {strides = array<i32>} : memref<1x128xf32, #tpu.memory_space<vmem>>, vector<1x128xf32>,
      } else {
      }
    } else {
    }
    %c2_i32 = arith.constant 2 : i32
    %11 = arith.cmpi eq, %arg0, %c2_i32 : i32
    %12 = arith.extui %11 : i1 to i32
    %c0_i32_5 = arith.constant 0 : i32
    %13 = arith.cmpi ne, %12, %c0_i32_5 : i32
    scf.if %13 {
      %c0_i32_7 = arith.constant 0 : i32
      %17 = arith.cmpi eq, %arg1, %c0_i32_7 : i32
      %18 = arith.extui %17 : i1 to i32
      %c0_i32_8 = arith.constant 0 : i32
      %19 = arith.cmpi ne, %18, %c0_i32_8 : i32
      scf.if %19 {
        %c0_25 = arith.constant 0 : index
        %c0_26 = arith.constant 0 : index
        %47 = vector.load %arg21[%c0_25, %c0_26] : memref<1x128xf32, #tpu.memory_space<vmem>>, vector<1x128xf32>
        %cst_27 = arith.constant 2.500000e-02 : f32
        %48 = vector.broadcast %cst_27 : f32 to vector<1x128xf32>
        %49 = arith.mulf %47, %48 : vector<1x128xf32>
        %c0_28 = arith.constant 0 : index
        %c0_29 = arith.constant 0 : index
        %50 = vector.load %arg22[%c0_28, %c0_29] : memref<1x128xf32, #tpu.memory_space<vmem>>, vector<1x128xf32>
        %cst_30 = arith.constant 2.500000e-02 : f32
        %51 = vector.broadcast %cst_30 : f32 to vector<1x128xf32>
        %52 = arith.mulf %50, %51 : vector<1x128xf32>
        %53 = arith.mulf %49, %49 : vector<1x128xf32>
        %54 = arith.subf %52, %53 : vector<1x128xf32>
        %cst_31 = arith.constant 0.000000e+00 : f32
        %55 = vector.broadcast %cst_31 : f32 to vector<1x128xf32>
        %56 = arith.maximumf %54, %55 : vector<1x128xf32>
        %c0_32 = arith.constant 0 : index
        %c0_33 = arith.constant 0 : index
        %57 = vector.load %arg7[%c0_32, %c0_33] : memref<1x128xf32, #tpu.memory_space<vmem>>, vector<1x128xf32>
        %cst_34 = arith.constant 9.99999974E-6 : f32
        %58 = vector.broadcast %cst_34 : f32 to vector<1x128xf32>
        %59 = arith.addf %56, %58 : vector<1x128xf32>
        %60 = math.rsqrt %59 : vector<1x128xf32>
        %61 = arith.mulf %57, %60 : vector<1x128xf32>
        %c0_35 = arith.constant 0 : index
        %c0_36 = arith.constant 0 : index
        %62 = vector.load %arg21[%c0_35, %c0_36] : memref<1x128xf32, #tpu.memory_space<vmem>>, vector<1x128xf32>
        tpu.vector_store %arg21[%c0_35, %c0_36], %61 {strides = array<i32>} : memref<1x128xf32, #tpu.memory_space<vmem>>, vector<1x128xf32>,
        %c0_37 = arith.constant 0 : index
        %c0_38 = arith.constant 0 : index
        %63 = vector.load %arg8[%c0_37, %c0_38] : memref<1x128xf32, #tpu.memory_space<vmem>>, vector<1x128xf32>
        %64 = arith.mulf %49, %61 : vector<1x128xf32>
        %65 = arith.subf %63, %64 : vector<1x128xf32>
        %c0_39 = arith.constant 0 : index
        %c0_40 = arith.constant 0 : index
        %66 = vector.load %arg22[%c0_39, %c0_40] : memref<1x128xf32, #tpu.memory_space<vmem>>, vector<1x128xf32>
        tpu.vector_store %arg22[%c0_39, %c0_40], %65 {strides = array<i32>} : memref<1x128xf32, #tpu.memory_space<vmem>>, vector<1x128xf32>,
      } else {
      }
      %20 = arith.index_cast %arg1 : i32 to index
      %c0 = arith.constant 0 : index
      %c0_9 = arith.constant 0 : index
      %21 = vector.load %arg17[%20, %c0, %c0_9] : memref<3x16x128xf32, #tpu.memory_space<vmem>>, vector<1x16x128xf32>
      %22 = vector.shape_cast %21 : vector<1x16x128xf32> to vector<16x128xf32>
      %c0_10 = arith.constant 0 : index
      %c0_11 = arith.constant 0 : index
      %23 = vector.load %arg21[%c0_10, %c0_11] : memref<1x128xf32, #tpu.memory_space<vmem>>, vector<1x128xf32>
      %24 = vector.broadcast %23 : vector<1x128xf32> to vector<16x128xf32>
      %25 = arith.mulf %22, %24 : vector<16x128xf32>
      %c0_12 = arith.constant 0 : index
      %c0_13 = arith.constant 0 : index
      %26 = vector.load %arg22[%c0_12, %c0_13] : memref<1x128xf32, #tpu.memory_space<vmem>>, vector<1x128xf32>
      %27 = vector.broadcast %26 : vector<1x128xf32> to vector<16x128xf32>
      %28 = arith.addf %25, %27 : vector<16x128xf32>
      %cst = arith.constant 0.000000e+00 : f32
      %29 = vector.broadcast %cst : f32 to vector<16x128xf32>
      %30 = arith.maximumf %28, %29 : vector<16x128xf32>
      %31 = arith.truncf %30 : vector<16x128xf32> to vector<16x128xbf16>
      %c0_14 = arith.constant 0 : index
      %c0_15 = arith.constant 0 : index
      %32 = vector.load %arg9[%c0_14, %c0_15] : memref<128x128xbf16, #tpu.memory_space<vmem>>, vector<128x128xbf16>
      %cst_16 = arith.constant dense<0.000000e+00> : vector<16x128xf32>
      %33 = tpu.matmul %31, %32, %cst_16 {dimension_numbers = #tpu.dot_dimension_numbers<[1], [0], [0], [1], [0, 0, 1, 1], [], []>} : vector<16x128xbf16>, vector<128x128xbf16>, vector<16x128xf32> -> vector<16x128xf32>
      %c0_17 = arith.constant 0 : index
      %c0_18 = arith.constant 0 : index
      %34 = vector.load %arg10[%c0_17, %c0_18] : memref<1x128xf32, #tpu.memory_space<vmem>>, vector<1x128xf32>
      %35 = vector.broadcast %34 : vector<1x128xf32> to vector<16x128xf32>
      %36 = arith.addf %33, %35 : vector<16x128xf32>
      %37 = arith.index_cast %arg1 : i32 to index
      %c0_19 = arith.constant 0 : index
      %c0_20 = arith.constant 0 : index
      %38 = vector.load %arg18[%37, %c0_19, %c0_20] : memref<3x16x128xf32, #tpu.memory_space<vmem>>, vector<1x16x128xf32>
      %39 = vector.shape_cast %38 : vector<1x16x128xf32> to vector<16x128xf32>
      %40 = vector.shape_cast %36 : vector<16x128xf32> to vector<1x16x128xf32>
      tpu.vector_store %arg18[%37, %c0_19, %c0_20], %40 {strides = array<i32>} : memref<3x16x128xf32, #tpu.memory_space<vmem>>, vector<1x16x128xf32>,
      %c2_i32_21 = arith.constant 2 : i32
      %41 = arith.cmpi eq, %arg1, %c2_i32_21 : i32
      %42 = arith.extui %41 : i1 to i32
      %c0_i32_22 = arith.constant 0 : i32
      %43 = arith.cmpi ne, %42, %c0_i32_22 : i32
      scf.if %43 {
        %47 = tpu.iota {dimensions = array<i32: 0>} : vector<16x1xi32>
        %c8_i32 = arith.constant 8 : i32
        %48 = vector.broadcast %c8_i32 : i32 to vector<16x1xi32>
        %49 = arith.cmpi slt, %47, %48 : vector<16x1xi32>
        %50 = arith.extui %49 : vector<16x1xi1> to vector<16x1xi32>
        %51 = arith.sitofp %50 : vector<16x1xi32> to vector<16x1xf32>
        %52 = vector.broadcast %51 : vector<16x1xf32> to vector<16x128xf32>
        %53 = arith.mulf %36, %52 : vector<16x128xf32>
        %c0_25 = arith.constant 0 : index
        %c0_26 = arith.constant 0 : index
        %54 = vector.load %arg23[%c0_25, %c0_26] : memref<1x128xf32, #tpu.memory_space<vmem>>, vector<1x128xf32>
        %cst_27 = arith.constant dense<0.000000e+00> : vector<128xf32>
        %55 = vector.multi_reduction <add>, %53, %cst_27 [0] : vector<16x128xf32> to vector<128xf32>
        %56 = vector.shape_cast %55 : vector<128xf32> to vector<1x128xf32>
        %57 = arith.addf %54, %56 : vector<1x128xf32>
        %c0_28 = arith.constant 0 : index
        %c0_29 = arith.constant 0 : index
        %58 = vector.load %arg23[%c0_28, %c0_29] : memref<1x128xf32, #tpu.memory_space<vmem>>, vector<1x128xf32>
        tpu.vector_store %arg23[%c0_28, %c0_29], %57 {strides = array<i32>} : memref<1x128xf32, #tpu.memory_space<vmem>>, vector<1x128xf32>,
        %c0_30 = arith.constant 0 : index
        %c0_31 = arith.constant 0 : index
        %59 = vector.load %arg24[%c0_30, %c0_31] : memref<1x128xf32, #tpu.memory_space<vmem>>, vector<1x128xf32>
        %60 = arith.mulf %53, %53 : vector<16x128xf32>
        %cst_32 = arith.constant dense<0.000000e+00> : vector<128xf32>
        %61 = vector.multi_reduction <add>, %60, %cst_32 [0] : vector<16x128xf32> to vector<128xf32>
        %62 = vector.shape_cast %61 : vector<128xf32> to vector<1x128xf32>
        %63 = arith.addf %59, %62 : vector<1x128xf32>
        %c0_33 = arith.constant 0 : index
        %c0_34 = arith.constant 0 : index
        %64 = vector.load %arg24[%c0_33, %c0_34] : memref<1x128xf32, #tpu.memory_space<vmem>>, vector<1x128xf32>
        tpu.vector_store %arg24[%c0_33, %c0_34], %63 {strides = array<i32>} : memref<1x128xf32, #tpu.memory_space<vmem>>, vector<1x128xf32>,
      } else {
      }
      %c2_i32_23 = arith.constant 2 : i32
      %44 = arith.cmpi ne, %arg1, %c2_i32_23 : i32
      %45 = arith.extui %44 : i1 to i32
      %c0_i32_24 = arith.constant 0 : i32
      %46 = arith.cmpi ne, %45, %c0_i32_24 : i32
      scf.if %46 {
        %c0_25 = arith.constant 0 : index
        %c0_26 = arith.constant 0 : index
        %47 = vector.load %arg23[%c0_25, %c0_26] : memref<1x128xf32, #tpu.memory_space<vmem>>, vector<1x128xf32>
        %cst_27 = arith.constant dense<0.000000e+00> : vector<128xf32>
        %48 = vector.multi_reduction <add>, %36, %cst_27 [0] : vector<16x128xf32> to vector<128xf32>
        %49 = vector.shape_cast %48 : vector<128xf32> to vector<1x128xf32>
        %50 = arith.addf %47, %49 : vector<1x128xf32>
        %c0_28 = arith.constant 0 : index
        %c0_29 = arith.constant 0 : index
        %51 = vector.load %arg23[%c0_28, %c0_29] : memref<1x128xf32, #tpu.memory_space<vmem>>, vector<1x128xf32>
        tpu.vector_store %arg23[%c0_28, %c0_29], %50 {strides = array<i32>} : memref<1x128xf32, #tpu.memory_space<vmem>>, vector<1x128xf32>,
        %c0_30 = arith.constant 0 : index
        %c0_31 = arith.constant 0 : index
        %52 = vector.load %arg24[%c0_30, %c0_31] : memref<1x128xf32, #tpu.memory_space<vmem>>, vector<1x128xf32>
        %53 = arith.mulf %36, %36 : vector<16x128xf32>
        %cst_32 = arith.constant dense<0.000000e+00> : vector<128xf32>
        %54 = vector.multi_reduction <add>, %53, %cst_32 [0] : vector<16x128xf32> to vector<128xf32>
        %55 = vector.shape_cast %54 : vector<128xf32> to vector<1x128xf32>
        %56 = arith.addf %52, %55 : vector<1x128xf32>
        %c0_33 = arith.constant 0 : index
        %c0_34 = arith.constant 0 : index
        %57 = vector.load %arg24[%c0_33, %c0_34] : memref<1x128xf32, #tpu.memory_space<vmem>>, vector<1x128xf32>
        tpu.vector_store %arg24[%c0_33, %c0_34], %56 {strides = array<i32>} : memref<1x128xf32, #tpu.memory_space<vmem>>, vector<1x128xf32>,
      } else {
      }
    } else {
    }
    %c3_i32 = arith.constant 3 : i32
    %14 = arith.cmpi eq, %arg0, %c3_i32 : i32
    %15 = arith.extui %14 : i1 to i32
    %c0_i32_6 = arith.constant 0 : i32
    %16 = arith.cmpi ne, %15, %c0_i32_6 : i32
    scf.if %16 {
      %c0_i32_7 = arith.constant 0 : i32
      %17 = arith.cmpi eq, %arg1, %c0_i32_7 : i32
      %18 = arith.extui %17 : i1 to i32
      %c0_i32_8 = arith.constant 0 : i32
      %19 = arith.cmpi ne, %18, %c0_i32_8 : i32
      scf.if %19 {
        %c0_21 = arith.constant 0 : index
        %c0_22 = arith.constant 0 : index
        %39 = vector.load %arg23[%c0_21, %c0_22] : memref<1x128xf32, #tpu.memory_space<vmem>>, vector<1x128xf32>
        %cst_23 = arith.constant 2.500000e-02 : f32
        %40 = vector.broadcast %cst_23 : f32 to vector<1x128xf32>
        %41 = arith.mulf %39, %40 : vector<1x128xf32>
        %c0_24 = arith.constant 0 : index
        %c0_25 = arith.constant 0 : index
        %42 = vector.load %arg24[%c0_24, %c0_25] : memref<1x128xf32, #tpu.memory_space<vmem>>, vector<1x128xf32>
        %cst_26 = arith.constant 2.500000e-02 : f32
        %43 = vector.broadcast %cst_26 : f32 to vector<1x128xf32>
        %44 = arith.mulf %42, %43 : vector<1x128xf32>
        %45 = arith.mulf %41, %41 : vector<1x128xf32>
        %46 = arith.subf %44, %45 : vector<1x128xf32>
        %cst_27 = arith.constant 0.000000e+00 : f32
        %47 = vector.broadcast %cst_27 : f32 to vector<1x128xf32>
        %48 = arith.maximumf %46, %47 : vector<1x128xf32>
        %c0_28 = arith.constant 0 : index
        %c0_29 = arith.constant 0 : index
        %49 = vector.load %arg11[%c0_28, %c0_29] : memref<1x128xf32, #tpu.memory_space<vmem>>, vector<1x128xf32>
        %cst_30 = arith.constant 9.99999974E-6 : f32
        %50 = vector.broadcast %cst_30 : f32 to vector<1x128xf32>
        %51 = arith.addf %48, %50 : vector<1x128xf32>
        %52 = math.rsqrt %51 : vector<1x128xf32>
        %53 = arith.mulf %49, %52 : vector<1x128xf32>
        %c0_31 = arith.constant 0 : index
        %c0_32 = arith.constant 0 : index
        %54 = vector.load %arg23[%c0_31, %c0_32] : memref<1x128xf32, #tpu.memory_space<vmem>>, vector<1x128xf32>
        tpu.vector_store %arg23[%c0_31, %c0_32], %53 {strides = array<i32>} : memref<1x128xf32, #tpu.memory_space<vmem>>, vector<1x128xf32>,
        %c0_33 = arith.constant 0 : index
        %c0_34 = arith.constant 0 : index
        %55 = vector.load %arg12[%c0_33, %c0_34] : memref<1x128xf32, #tpu.memory_space<vmem>>, vector<1x128xf32>
        %56 = arith.mulf %41, %53 : vector<1x128xf32>
        %57 = arith.subf %55, %56 : vector<1x128xf32>
        %c0_35 = arith.constant 0 : index
        %c0_36 = arith.constant 0 : index
        %58 = vector.load %arg24[%c0_35, %c0_36] : memref<1x128xf32, #tpu.memory_space<vmem>>, vector<1x128xf32>
        tpu.vector_store %arg24[%c0_35, %c0_36], %57 {strides = array<i32>} : memref<1x128xf32, #tpu.memory_space<vmem>>, vector<1x128xf32>,
      } else {
      }
      %20 = arith.index_cast %arg1 : i32 to index
      %c0 = arith.constant 0 : index
      %c0_9 = arith.constant 0 : index
      %21 = vector.load %arg18[%20, %c0, %c0_9] : memref<3x16x128xf32, #tpu.memory_space<vmem>>, vector<1x16x128xf32>
      %22 = vector.shape_cast %21 : vector<1x16x128xf32> to vector<16x128xf32>
      %c0_10 = arith.constant 0 : index
      %c0_11 = arith.constant 0 : index
      %23 = vector.load %arg23[%c0_10, %c0_11] : memref<1x128xf32, #tpu.memory_space<vmem>>, vector<1x128xf32>
      %24 = vector.broadcast %23 : vector<1x128xf32> to vector<16x128xf32>
      %25 = arith.mulf %22, %24 : vector<16x128xf32>
      %c0_12 = arith.constant 0 : index
      %c0_13 = arith.constant 0 : index
      %26 = vector.load %arg24[%c0_12, %c0_13] : memref<1x128xf32, #tpu.memory_space<vmem>>, vector<1x128xf32>
      %27 = vector.broadcast %26 : vector<1x128xf32> to vector<16x128xf32>
      %28 = arith.addf %25, %27 : vector<16x128xf32>
      %cst = arith.constant 0.000000e+00 : f32
      %29 = vector.broadcast %cst : f32 to vector<16x128xf32>
      %30 = arith.maximumf %28, %29 : vector<16x128xf32>
      %31 = arith.truncf %30 : vector<16x128xf32> to vector<16x128xbf16>
      %c0_14 = arith.constant 0 : index
      %c0_15 = arith.constant 0 : index
      %32 = vector.load %arg13[%c0_14, %c0_15] : memref<128x128xbf16, #tpu.memory_space<vmem>>, vector<128x128xbf16>
      %cst_16 = arith.constant dense<0.000000e+00> : vector<16x128xf32>
      %33 = tpu.matmul %31, %32, %cst_16 {dimension_numbers = #tpu.dot_dimension_numbers<[1], [0], [0], [1], [0, 0, 1, 1], [], []>} : vector<16x128xbf16>, vector<128x128xbf16>, vector<16x128xf32> -> vector<16x128xf32>
      %c0_17 = arith.constant 0 : index
      %c0_18 = arith.constant 0 : index
      %34 = vector.load %arg14[%c0_17, %c0_18] : memref<1x128xf32, #tpu.memory_space<vmem>>, vector<1x128xf32>
      %35 = vector.broadcast %34 : vector<1x128xf32> to vector<16x128xf32>
      %36 = arith.addf %33, %35 : vector<16x128xf32>
      %37 = math.tanh %36 : vector<16x128xf32>
      %c0_19 = arith.constant 0 : index
      %c0_20 = arith.constant 0 : index
      %38 = vector.load %arg15[%c0_19, %c0_20] : memref<16x128xf32, #tpu.memory_space<vmem>>, vector<16x128xf32>
      tpu.vector_store %arg15[%c0_19, %c0_20], %37 {strides = array<i32>} : memref<16x128xf32, #tpu.memory_space<vmem>>, vector<16x128xf32>,
    } else {
    }
    return
  }
  func.func @transform_0(%arg0: i32, %arg1: i32) -> (i32, i32) {
    %c0_i32 = arith.constant 0 : i32
    %0 = arith.cmpi eq, %arg0, %c0_i32 : i32
    %c2_i32 = arith.constant 2 : i32
    %1 = arith.select %0, %arg1, %c2_i32 : i32
    %c0_i32_0 = arith.constant 0 : i32
    %c0_i32_1 = arith.constant 0 : i32
    return %1, %c0_i32_0 : i32, i32
  }
  func.func @transform_1(%arg0: i32, %arg1: i32) -> (i32, i32) {
    %c0_i32 = arith.constant 0 : i32
    %c0_i32_0 = arith.constant 0 : i32
    %c0_i32_1 = arith.constant 0 : i32
    return %c0_i32, %c0_i32_0 : i32, i32
  }
  func.func @transform_2(%arg0: i32, %arg1: i32) -> (i32, i32) {
    %c0_i32 = arith.constant 0 : i32
    %c0_i32_0 = arith.constant 0 : i32
    %c0_i32_1 = arith.constant 0 : i32
    return %c0_i32, %c0_i32_0 : i32, i32
  }
  func.func @transform_3(%arg0: i32, %arg1: i32) -> (i32, i32) {
    %c0_i32 = arith.constant 0 : i32
    %c0_i32_0 = arith.constant 0 : i32
    %c0_i32_1 = arith.constant 0 : i32
    return %c0_i32, %c0_i32_0 : i32, i32
  }
  func.func @transform_4(%arg0: i32, %arg1: i32) -> (i32, i32) {
    %c0_i32 = arith.constant 0 : i32
    %c0_i32_0 = arith.constant 0 : i32
    %c0_i32_1 = arith.constant 0 : i32
    return %c0_i32, %c0_i32_0 : i32, i32
  }
  func.func @transform_5(%arg0: i32, %arg1: i32) -> (i32, i32) {
    %c0_i32 = arith.constant 0 : i32
    %c0_i32_0 = arith.constant 0 : i32
    %c0_i32_1 = arith.constant 0 : i32
    return %c0_i32, %c0_i32_0 : i32, i32
  }
  func.func @transform_6(%arg0: i32, %arg1: i32) -> (i32, i32) {
    %c0_i32 = arith.constant 0 : i32
    %c0_i32_0 = arith.constant 0 : i32
    %c0_i32_1 = arith.constant 0 : i32
    return %c0_i32, %c0_i32_0 : i32, i32
  }
  func.func @transform_7(%arg0: i32, %arg1: i32) -> (i32, i32) {
    %c0_i32 = arith.constant 0 : i32
    %c0_i32_0 = arith.constant 0 : i32
    %c0_i32_1 = arith.constant 0 : i32
    return %c0_i32, %c0_i32_0 : i32, i32
  }
  func.func @transform_8(%arg0: i32, %arg1: i32) -> (i32, i32) {
    %c0_i32 = arith.constant 0 : i32
    %c0_i32_0 = arith.constant 0 : i32
    %c0_i32_1 = arith.constant 0 : i32
    return %c0_i32, %c0_i32_0 : i32, i32
  }
  func.func @transform_9(%arg0: i32, %arg1: i32) -> (i32, i32) {
    %c0_i32 = arith.constant 0 : i32
    %c0_i32_0 = arith.constant 0 : i32
    %c0_i32_1 = arith.constant 0 : i32
    return %c0_i32, %c0_i32_0 : i32, i32
  }
  func.func @transform_10(%arg0: i32, %arg1: i32) -> (i32, i32) {
    %c0_i32 = arith.constant 0 : i32
    %c0_i32_0 = arith.constant 0 : i32
    %c0_i32_1 = arith.constant 0 : i32
    return %c0_i32, %c0_i32_0 : i32, i32
  }
  func.func @transform_11(%arg0: i32, %arg1: i32) -> (i32, i32) {
    %c0_i32 = arith.constant 0 : i32
    %c0_i32_0 = arith.constant 0 : i32
    %c0_i32_1 = arith.constant 0 : i32
    return %c0_i32, %c0_i32_0 : i32, i32
  }
  func.func @transform_12(%arg0: i32, %arg1: i32) -> (i32, i32) {
    %c0_i32 = arith.constant 0 : i32
    %c0_i32_0 = arith.constant 0 : i32
    %c0_i32_1 = arith.constant 0 : i32
    return %c0_i32, %c0_i32_0 : i32, i32
  }
  func.func @transform_13(%arg0: i32, %arg1: i32) -> (i32, i32) {
    %c3_i32 = arith.constant 3 : i32
    %0 = arith.cmpi eq, %arg0, %c3_i32 : i32
    %c0_i32 = arith.constant 0 : i32
    %1 = arith.select %0, %arg1, %c0_i32 : i32
    %c0_i32_0 = arith.constant 0 : i32
    %c0_i32_1 = arith.constant 0 : i32
    return %1, %c0_i32_0 : i32, i32
  }
}

</mosaic_0001>

<bundles_post_ra>
// kernel: actor_forward.1
= control target key start
LH: loop header
LB: loop body
LE: loop exit
PB: predicated region body
PF: predicated region fallthrough
CT: control target
= control target key end

     0   :  { %s1490_s25 = smov 0   ;;  %s1492_s26 = smov 0   ;;  %s1651_s0 = inlined_call_operand.vmem [shape: f32[48,16], index: 0, kind: input, shape index: {}]   ;;  %s1652_s1 = inlined_call_operand.vmem [shape: f32[1,16], index: 1, kind: input, shape index: {}]   ;;  %s1653_s2 = inlined_call_operand.vmem [shape: f32[1,16], index: 2, kind: input, shape index: {}]   ;;  %s1654_s3 = inlined_call_operand.vmem [shape: bf16[16,128], index: 3, kind: input, shape index: {}]   ;;  %s1655_s4 = inlined_call_operand.vmem [shape: f32[1,128], index: 4, kind: input, shape index: {}]   ;;  %s1656_s5 = inlined_call_operand.vmem [shape: f32[1,128], index: 5, kind: input, shape index: {}]   ;;  %s1657_s6 = inlined_call_operand.vmem [shape: f32[1,128], index: 6, kind: input, shape index: {}]   ;;  %s1658_s7 = inlined_call_operand.vmem [shape: bf16[128,128], index: 7, kind: input, shape index: {}]   ;;  %s1659_s8 = inlined_call_operand.vmem [shape: f32[1,128], index: 8, kind: input, shape index: {}]   ;;  %s1660_s9 = inlined_call_operand.vmem [shape: f32[1,128], index: 9, kind: input, shape index: {}]   ;;  %s1661_s10 = inlined_call_operand.vmem [shape: f32[1,128], index: 10, kind: input, shape index: {}]   ;;  %s1662_s11 = inlined_call_operand.vmem [shape: bf16[128,128], index: 11, kind: input, shape index: {}]   ;;  %s1663_s12 = inlined_call_operand.vmem [shape: f32[1,128], index: 12, kind: input, shape index: {}]   ;;  %s1664_s13 = inlined_call_operand.vmem [shape: f32[48,128], index: 13, kind: output, shape index: {}]  }
   0x1   :  { %s1494_s27 = smov 0   ;;  %s1496_s28 = smov 0  }
   0x2   :  { %s1498_s29 = smov 0  }
   0x3 LB: > { %s32_s30 = sadd.s32 1, %s1403_s27  ;;  %s35_s14 = sadd.s32 1, %s1407_s28  ;;  %s1411_s29 = sphi %s1498_s29, %s23_s29   ;;  %s1407_s28 = sphi %s1496_s28, %s1672_s28   ;;  %s1403_s27 = sphi %s1494_s27, %s1671_s27   ;;  %s1399_s26 = sphi %s1492_s26, %s1670_s26   ;;  %s1395_s25 = sphi %s1490_s25, %s1669_s25  }
   0x4   : > { %p33_p0 = scmp.ge.s32.totalorder %s32_s30, 3  ;;  %p1184_p1 = scmp.ge.s32.totalorder %s1411_s29, 1 }
   0x5   : > { %p412_p2 = scmp.lt.s32.totalorder %s1411_s29, 13 }
   0x6   : > { %s1674_s30 = smov (%p33_p0, %s32_s30), 0  ;;  %s1676_s14 = smov (!%p33_p0, %s35_s14), %s1407_s28 }
   0x7   : > { %1665 = sst [smem:[#allocation11_spill]] %s1674_s30  ;;  %p413_p3 = pnand %p1184_p1, %p412_p2 }
   0x8   : > { %p37_p4 = scmp.ge.s32.totalorder %s1676_s14, 4  ;;  %p460_p5 = scmp.eq.s32.totalorder (!%p413_p3), %s1399_s26, 0 }
   0x9   : > { %416 = sbr.rel (%p413_p3) target bundleno = 972 (0x3cc), region = 72  ;;  %p470_p6 = scmp.eq.s32.totalorder (!%p413_p3), %s1399_s26, 3 }
   0xa   : > { %s1678_s14 = smov (%p37_p4, %s1676_s14), 0  ;;  %p482_p7 = scmp.eq.s32.totalorder (!%p413_p3), %s1395_s25, 0 }
   0xb   : > { %1666 = sst [smem:[#allocation12_spill]] %s1678_s14 }
   0xc   : > { %p483_p8 = pnand (!%p413_p3), %p482_p7, %p460_p5 }
   0xe   : > { %s461_s15 = scalar_select %p460_p5, %s1395_s25, 2 }
   0xf   : > { %s471_s16 = scalar_select %p470_p6, %s1395_s25, 0 }
  0x10   : > { %s1185_s17 = sshll.u32 %s461_s15, 1 }
  0x11   : > { %p463_p9 = scmp.lt.s32.totalorder %s1185_s17, 5  ;;  %s1187_s18 = sshll.u32 %s471_s16, 1 }
  0x12   : > { %p473_p10 = scmp.lt.s32.totalorder %s1187_s18, 5  ;;  %486 = sbr.rel (%p483_p8) target bundleno = 27 (0x1b), region = 76 }
  0x13   : > { %s1680_s17 = smov (!%p463_p9, %s1185_s17), 5 }
  0x14   : > { %s1682_s18 = smov (!%p473_p10, %s1187_s18), 5  ;;  %s1186_s19 = sshll.u32 %s1680_s17, 3 }
  0x15   : > { %s466_s22 = scalar_lea.vmem %s1651_s0, %s1186_s19  ;;  %s1188_s23 = sshll.u32 %s1682_s18, 3 }
  0x16   : > { %s1535_s30 = scalar_lea.vmem %s1664_s13, %s1188_s23 }
  0x17   : > { %vm487_vm0 = vcmask 122880   ;;  %v1413_v0 = vmov 0.0  }
  0x18   : > { %488 = vst.msk [vmem:[#allocation5] sm:$0x1] %vm487_vm0, %v1413_v0  ;;  %489 = vst.msk [vmem:[#allocation6] sm:$0x1] %vm487_vm0, %v1413_v0 }
  0x19   : > { %490 = vst [vmem:[#allocation7] sm:$0x1] %v1413_v0  ;;  %491 = vst [vmem:[#allocation8] sm:$0x1] %v1413_v0 }
  0x1a   : > { %492 = vst [vmem:[#allocation9] sm:$0x1] %v1413_v0  ;;  %493 = vst [vmem:[#allocation10] sm:$0x1] %v1413_v0 }
  0x1b PF: > { %p1189_p11 = scmp.ne.s32.totalorder %s1399_s26, 0 }
  0x1c   : > { %s1190_s15 = sshll.u32 (!%p1189_p11), %s1395_s25, 4 }
  0x1d   : > { %496 = sbr.rel (%p1189_p11) target bundleno = 55 (0x37), region = 80  ;;  %s500_s14 = scalar_lea.vmem (!%p1189_p11), [#allocation2], %s1190_s15 }
  0x22   : > { %v497_v1 = vld [vmem:[%s466_s22] sm:$0xff]  ;;  %vm501_vm1 = vcmask 130048   ;;  %v498_v2 = vld [vmem:[%s466_s22 + $0x8] sm:$0xff]  ;;  %v504_v20 = vld [vmem:[#allocation5] sm:$0x1]  ;;  %vm515_vm2 = vcmask 122880  }
  0x23   : > { %v505_v3 = vsel %vm501_vm1, %v497_v1, 0.0  ;;  %v518_v4 = vmul.f32 %v497_v1, %v497_v1  ;;  %v506_v5 = vsel %vm501_vm1, %v498_v2, 0.0  ;;  %v519_v6 = vmul.f32 %v498_v2, %v498_v2  ;;  %502 = vst.msk [vmem:[%s500_s14] sm:$0xff] %vm501_vm1, %v497_v1  ;;  %503 = vst.msk [vmem:[%s500_s14 + $0x8] sm:$0xff] %vm501_vm1, %v498_v2  ;;  %v517_v23 = vld [vmem:[#allocation6] sm:$0x1] }
  0x24   : > { %v507_v7 = vadd.f32 %v506_v5, %v505_v3 }
  0x25   : > { %v520_v8 = vsel %vm501_vm1, %v518_v4, 0.0  ;;  %v521_v9 = vsel %vm501_vm1, %v519_v6, 0.0 }
  0x26   : > { %v508_v10 = vrot.slane %v507_v7, 4  ;;  %v522_v11 = vadd.f32 %v521_v9, %v520_v8 }
  0x28   : > { %v509_v12 = vadd.f32 %v508_v10, %v507_v7  ;;  %v523_v13 = vrot.slane %v522_v11, 4 }
  0x2a   : > { %v510_v14 = vrot.slane %v509_v12, 2  ;;  %v524_v15 = vadd.f32 %v523_v13, %v522_v11 }
  0x2c   : > { %v511_v16 = vadd.f32 %v510_v14, %v509_v12  ;;  %v525_v17 = vrot.slane %v524_v15, 2 }
  0x2e   : > { %v512_v18 = vrot.slane %v511_v16, 1  ;;  %v526_v19 = vadd.f32 %v525_v17, %v524_v15 }
  0x30   : > { %v513_v21 = vadd.f32 %v512_v18, %v511_v16  ;;  %v527_v22 = vrot.slane %v526_v19, 1 }
  0x32   : > { %v514_v24 = vadd.f32 %v513_v21, %v504_v20  ;;  %v528_v25 = vadd.f32 %v527_v22, %v526_v19 }
  0x34   : > { %516 = vst.msk [vmem:[#allocation5] sm:$0x1] %vm515_vm2, %v514_v24  ;;  %v529_v26 = vadd.f32 %v528_v25, %v517_v23 }
  0x36   : > { %530 = vst.msk [vmem:[#allocation6] sm:$0x1] %vm515_vm2, %v529_v26 }
  0x37 PF: > { %p1191_p12 = scmp.ne.s32.totalorder %s1399_s26, 1 }
  0x38   : > { %p1192_p13 = scmp.ne.s32.totalorder (!%p1191_p12), %s1395_s25, 0 }
  0x39   : > { %534 = sbr.rel (%p1191_p12) target bundleno = 357 (0x165), region = 84 }
  0x3e   : > { %537 = sbr.rel (%p1192_p13) target bundleno = 99 (0x63), region = 88 }
  0x43   : > { %v538_v27 = vld [vmem:[#allocation5] sm:$0x1]  ;;  %v540_v28 = vld [vmem:[#allocation6] sm:$0x1]  ;;  %v545_v35 = vld [vmem:[%s1652_s1] sm:$0x1] }
  0x44   : > { %v539_v29 = vmul.f32 0.025, %v538_v27  ;;  %v541_v30 = vmul.f32 0.025, %v540_v28  ;;  %vm549_vm3 = vcmask 122880  }
  0x45   : > { %v551_v38 = vld [vmem:[%s1653_s2] sm:$0x1] }
  0x46   : > { %v542_v31 = vmul.f32 %v539_v29, %v539_v29 }
  0x48   : > { %v543_v32 = vsub.f32 %v541_v30, %v542_v31 }
  0x4a   : > { %v544_v33 = vmax.f32 %v543_v32, 0.0 }
  0x4c   : > { %v546_v34 = vadd.f32 1e-05, %v544_v33 }
  0x4e   : > { %1346 = vrsqrt.f32 %v546_v34 }
  0x5b   : > { %v1347_v36 = vpop.eup %1346 }
  0x5c   : > { %v548_v37 = vmul.f32 %v1347_v36, %v545_v35 }
  0x5e   : > { %550 = vst.msk [vmem:[#allocation5] sm:$0x1] %vm549_vm3, %v548_v37  ;;  %v552_v39 = vmul.f32 %v548_v37, %v539_v29 }
  0x60   : > { %v553_v40 = vsub.f32 %v551_v38, %v552_v39 }
  0x62   : > { %554 = vst.msk [vmem:[#allocation6] sm:$0x1] %vm549_vm3, %v553_v40 }
  0x63 PF: > { %v1348_v41 = vld [vmem:[%s1654_s3] sm:$0xff]   ;;  %v1414_v42 = vmov 0.0   ;;  %s1193_s22 = sshll.u32 %s1395_s25, 4  ;;  %vm1415_vm4 = vmmov 0   ;;  %vm593_vm5 = vcmask 130048   ;;  %p1199_p0 = scmp.ne.s32.totalorder %s1395_s25, 2 }
  0x64   : > { %1253 = vmatprep.subr.bf16.mxu0 %v1414_v42  ;;  %1255 = vmatprep.mubr.msk.bf16.mxu0 %vm1415_vm4, %v1414_v42  ;;  %s556_s23 = scalar_lea.vmem [#allocation2], %s1193_s22  ;;  %v1196_v52 = vld [vmem:[%s1655_s4] ss:$0 sm:$0xff]  ;;  %s638_s14 = scalar_lea.vmem [#allocation3], %s1193_s22 }
  0x65   : > { %v1194_v43 = vld [vmem:[#allocation5] ss:$0 sm:$0xff]  ;;  %1254 = vmatpush3.bf16.msra.mxu0 %v1348_v41  ;;  %v557_v44 = vld [vmem:[%s556_s23] sm:$0xff]  ;;  %v558_v45 = vld [vmem:[%s556_s23 + $0x8] sm:$0xff] }
  0x66   : > { %v566_v47 = vmul.f32 %v1194_v43, %v557_v44  ;;  %v567_v48 = vmul.f32 %v1194_v43, %v558_v45 }
  0x69   : > { %v1195_v46 = vld [vmem:[#allocation6] ss:$0 sm:$0xff] }
  0x6a   : > { %v575_v49 = vadd.f32 %v1195_v46, %v566_v47  ;;  %v576_v50 = vadd.f32 %v1195_v46, %v567_v48 }
  0x6c   : > { %v577_v51 = vpack.c.bf16 %v576_v50, %v575_v49 }
  0x6e   : > { %1256 = vmatmul.mubr.msk.bf16.vlgmr.msra.gmra.mxu0 %vm593_vm5, %v577_v51 }
 0x12e   : > { %v631_v53 = vpop.f32.mrf.mxu0 }
 0x12f   : > { %v632_v54 = vadd.f32 %v1196_v52, %v631_v53 }
 0x130   : > { %v1257_v55 = vpop.f32.mrf.mxu0 }
 0x131   : > { %639 = vst [vmem:[%s638_s14] sm:$0xff] %v632_v54  ;;  %644 = sbr.rel (%p1199_p0) target bundleno = 331 (0x14b), region = 92 }
 0x132   : > { %v634_v56 = vpop.f32.mrf.mxu0 }
 0x133   : > { %v635_v57 = vadd.f32 %v1196_v52, %v634_v56 }
 0x134   : > { %v1258_v58 = vpop.f32.mrf.mxu0 }
 0x135   : > { %640 = vst [vmem:[%s638_s14 + $0x8] sm:$0xff] %v635_v57 }
 0x136   : > { %v655_v59 = vmul.f32 0.0, %v635_v57  ;;  %v667_v60 = vmul.f32 %v632_v54, %v632_v54  ;;  %v656_v9 = vld [vmem:[#allocation7] sm:$0x1]  ;;  %v666_v12 = vld [vmem:[#allocation8] sm:$0x1] }
 0x138   : > { %v657_v61 = vadd.f32 %v655_v59, %v632_v54  ;;  %v668_v62 = vmul.f32 %v655_v59, %v655_v59 }
 0x13a   : > { %v658_v63 = vrot.slane %v657_v61, 4  ;;  %v669_v0 = vadd.f32 %v668_v62, %v667_v60 }
 0x13c   : > { %v659_v1 = vadd.f32 %v658_v63, %v657_v61  ;;  %v670_v2 = vrot.slane %v669_v0, 4 }
 0x13e   : > { %v660_v3 = vrot.slane %v659_v1, 2  ;;  %v671_v4 = vadd.f32 %v670_v2, %v669_v0 }
 0x140   : > { %v661_v5 = vadd.f32 %v660_v3, %v659_v1  ;;  %v672_v6 = vrot.slane %v671_v4, 2 }
 0x142   : > { %v662_v7 = vrot.slane %v661_v5, 1  ;;  %v673_v8 = vadd.f32 %v672_v6, %v671_v4 }
 0x144   : > { %v663_v10 = vadd.f32 %v662_v7, %v661_v5  ;;  %v674_v11 = vrot.slane %v673_v8, 1 }
 0x146   : > { %v664_v13 = vadd.f32 %v663_v10, %v656_v9  ;;  %v675_v14 = vadd.f32 %v674_v11, %v673_v8 }
 0x148   : > { %665 = vst [vmem:[#allocation7] sm:$0x1] %v664_v13  ;;  %v676_v15 = vadd.f32 %v675_v14, %v666_v12 }
 0x14a   : > { %677 = vst [vmem:[#allocation8] sm:$0x1] %v676_v15 }
 0x14b PF: > { %p1200_p1 = scmp.eq.s32.totalorder %s1395_s25, 2 }
 0x14d   : > { %681 = sbr.rel (%p1200_p1) target bundleno = 357 (0x165), region = 96 }
 0x152   : > { %v683_v16 = vadd.f32 %v635_v57, %v632_v54  ;;  %v693_v17 = vmul.f32 %v632_v54, %v632_v54  ;;  %v694_v18 = vmul.f32 %v635_v57, %v635_v57  ;;  %v682_v29 = vld [vmem:[#allocation7] sm:$0x1]  ;;  %v692_v32 = vld [vmem:[#allocation8] sm:$0x1] }
 0x154   : > { %v684_v19 = vrot.slane %v683_v16, 4  ;;  %v695_v20 = vadd.f32 %v694_v18, %v693_v17 }
 0x156   : > { %v685_v21 = vadd.f32 %v684_v19, %v683_v16  ;;  %v696_v22 = vrot.slane %v695_v20, 4 }
 0x158   : > { %v686_v23 = vrot.slane %v685_v21, 2  ;;  %v697_v24 = vadd.f32 %v696_v22, %v695_v20 }
 0x15a   : > { %v687_v25 = vadd.f32 %v686_v23, %v685_v21  ;;  %v698_v26 = vrot.slane %v697_v24, 2 }
 0x15c   : > { %v688_v27 = vrot.slane %v687_v25, 1  ;;  %v699_v28 = vadd.f32 %v698_v26, %v697_v24 }
 0x15e   : > { %v689_v30 = vadd.f32 %v688_v27, %v687_v25  ;;  %v700_v31 = vrot.slane %v699_v28, 1 }
 0x160   : > { %v690_v33 = vadd.f32 %v689_v30, %v682_v29  ;;  %v701_v34 = vadd.f32 %v700_v31, %v699_v28 }
 0x162   : > { %691 = vst [vmem:[#allocation7] sm:$0x1] %v690_v33  ;;  %v702_v35 = vadd.f32 %v701_v34, %v692_v32 }
 0x164   : > { %703 = vst [vmem:[#allocation8] sm:$0x1] %v702_v35 }
 0x165 PF: > { %p1201_p2 = scmp.ne.s32.totalorder %s1399_s26, 2 }
 0x166   : > { %p1202_p3 = scmp.ne.s32.totalorder (!%p1201_p2), %s1395_s25, 0 }
 0x167   : > { %707 = sbr.rel (%p1201_p2) target bundleno = 681 (0x2a9), region = 100 }
 0x16c   : > { %710 = sbr.rel (%p1202_p3) target bundleno = 401 (0x191), region = 104 }
 0x171   : > { %v711_v36 = vld [vmem:[#allocation7] sm:$0x1]  ;;  %v713_v37 = vld [vmem:[#allocation8] sm:$0x1]  ;;  %v718_v44 = vld [vmem:[%s1656_s5] sm:$0x1] }
 0x172   : > { %v712_v38 = vmul.f32 0.025, %v711_v36  ;;  %v714_v39 = vmul.f32 0.025, %v713_v37  ;;  %v723_v47 = vld [vmem:[%s1657_s6] sm:$0x1] }
 0x174   : > { %v715_v40 = vmul.f32 %v712_v38, %v712_v38 }
 0x176   : > { %v716_v41 = vsub.f32 %v714_v39, %v715_v40 }
 0x178   : > { %v717_v42 = vmax.f32 %v716_v41, 0.0 }
 0x17a   : > { %v719_v43 = vadd.f32 1e-05, %v717_v42 }
 0x17c   : > { %1349 = vrsqrt.f32 %v719_v43 }
 0x189   : > { %v1350_v45 = vpop.eup %1349 }
 0x18a   : > { %v721_v46 = vmul.f32 %v1350_v45, %v718_v44 }
 0x18c   : > { %722 = vst [vmem:[#allocation7] sm:$0x1] %v721_v46  ;;  %v724_v48 = vmul.f32 %v721_v46, %v712_v38 }
 0x18e   : > { %v725_v49 = vsub.f32 %v723_v47, %v724_v48 }
 0x190   : > { %726 = vst [vmem:[#allocation8] sm:$0x1] %v725_v49 }
 0x191 PF: > { %v1351_v50 = vld [vmem:[%s1658_s7 + $0x38] sm:$0xff]   ;;  %v1416_v51 = vmov 0.0   ;;  %v1352_v52 = vld [vmem:[%s1658_s7 + $0x30] sm:$0xff]   ;;  %vm1417_vm6 = vmmov 0   ;;  %v1353_v53 = vld [vmem:[%s1658_s7 + $0x28] sm:$0xff]   ;;  %s1203_s14 = sshll.u32 %s1395_s25, 4 }
 0x192   : > { %1259 = vmatprep.subr.bf16.mxu0 %v1416_v51  ;;  %1275 = vmatprep.mubr.msk.bf16.mxu0 %vm1417_vm6, %v1416_v51  ;;  %v1354_v54 = vld [vmem:[%s1658_s7 + $0x20] sm:$0xff]   ;;  %v1355_v55 = vld [vmem:[%s1658_s7 + $0x18] sm:$0xff]   ;;  %s728_s20 = scalar_lea.vmem [#allocation3], %s1203_s14  ;;  %v1356_v61 = vld [vmem:[%s1658_s7 + $0x10] sm:$0xff]   ;;  %s864_s19 = scalar_lea.vmem [#allocation4], %s1203_s14 }
 0x193   : > { %1260 = vmatpush3.bf16.msra.mxu0 %v1351_v50  ;;  %v729_v56 = vld [vmem:[%s728_s20] sm:$0xff]  ;;  %v730_v57 = vld [vmem:[%s728_s20 + $0x8] sm:$0xff]  ;;  %v1204_v58 = vld [vmem:[#allocation7] ss:$0 sm:$0xff]  ;;  %p1215_p4 = scmp.ne.s32.totalorder %s1395_s25, 2 }
 0x194   : > { %1261 = vmatprep.subr.bf16.mxu0 %v1416_v51  ;;  %v738_v59 = vmul.f32 %v1204_v58, %v729_v56  ;;  %v739_v60 = vmul.f32 %v1204_v58, %v730_v57  ;;  %v1357_v1 = vld [vmem:[%s1658_s7 + $0x8] sm:$0xff]   ;;  %v1358_v4 = vld [vmem:[%s1658_s7] sm:$0xff]  }
 0x195   : > { %v1206_v6 = vld [vmem:[%s1659_s8] ss:$0 sm:$0xff] }
 0x197   : > { %1262 = vmatpush3.bf16.msra.mxu0 %v1352_v52  ;;  %v1205_v62 = vld [vmem:[#allocation8] ss:$0 sm:$0xff] }
 0x198   : > { %1263 = vmatprep.subr.bf16.mxu0 %v1416_v51  ;;  %v747_v63 = vadd.f32 %v1205_v62, %v738_v59  ;;  %v748_v0 = vadd.f32 %v1205_v62, %v739_v60 }
 0x19a   : > { %v749_v2 = vmax.f32 %v747_v63, 0.0  ;;  %v750_v3 = vmax.f32 %v748_v0, 0.0 }
 0x19b   : > { %1264 = vmatpush3.bf16.msra.mxu0 %v1353_v53 }
 0x19c   : > { %1265 = vmatprep.subr.bf16.mxu0 %v1416_v51  ;;  %v751_v5 = vpack.c.bf16 %v750_v3, %v749_v2 }
 0x19f   : > { %1266 = vmatpush3.bf16.msra.mxu0 %v1354_v54 }
 0x1a0   : > { %1267 = vmatprep.subr.bf16.mxu0 %v1416_v51 }
 0x1a3   : > { %1268 = vmatpush3.bf16.msra.mxu0 %v1355_v55 }
 0x1a4   : > { %1269 = vmatprep.subr.bf16.mxu0 %v1416_v51 }
 0x1a7   : > { %1270 = vmatpush3.bf16.msra.mxu0 %v1356_v61 }
 0x1a8   : > { %1271 = vmatprep.subr.bf16.mxu0 %v1416_v51 }
 0x1ab   : > { %1272 = vmatpush3.bf16.msra.mxu0 %v1357_v1 }
 0x1ac   : > { %1273 = vmatprep.subr.bf16.mxu0 %v1416_v51 }
 0x1af   : > { %1274 = vmatpush3.bf16.msra.mxu0 %v1358_v4 }
 0x1b2   : > { %1276 = vmatmul.mubr.bf16.vlgmr.msra.gmra.mxu0 %v751_v5 }
 0x272   : > { %v857_v7 = vpop.f32.mrf.mxu0 }
 0x273   : > { %v858_v8 = vadd.f32 %v1206_v6, %v857_v7 }
 0x274   : > { %v1277_v9 = vpop.f32.mrf.mxu0 }
 0x275   : > { %865 = vst [vmem:[%s864_s19] sm:$0xff] %v858_v8  ;;  %870 = sbr.rel (%p1215_p4) target bundleno = 655 (0x28f), region = 108 }
 0x276   : > { %v860_v10 = vpop.f32.mrf.mxu0 }
 0x277   : > { %v861_v11 = vadd.f32 %v1206_v6, %v860_v10 }
 0x278   : > { %v1278_v12 = vpop.f32.mrf.mxu0 }
 0x279   : > { %866 = vst [vmem:[%s864_s19 + $0x8] sm:$0xff] %v861_v11 }
 0x27a   : > { %v881_v13 = vmul.f32 0.0, %v861_v11  ;;  %v893_v14 = vmul.f32 %v858_v8, %v858_v8  ;;  %v882_v27 = vld [vmem:[#allocation9] sm:$0x1]  ;;  %v892_v30 = vld [vmem:[#allocation10] sm:$0x1] }
 0x27c   : > { %v883_v15 = vadd.f32 %v881_v13, %v858_v8  ;;  %v894_v16 = vmul.f32 %v881_v13, %v881_v13 }
 0x27e   : > { %v884_v17 = vrot.slane %v883_v15, 4  ;;  %v895_v18 = vadd.f32 %v894_v16, %v893_v14 }
 0x280   : > { %v885_v19 = vadd.f32 %v884_v17, %v883_v15  ;;  %v896_v20 = vrot.slane %v895_v18, 4 }
 0x282   : > { %v886_v21 = vrot.slane %v885_v19, 2  ;;  %v897_v22 = vadd.f32 %v896_v20, %v895_v18 }
 0x284   : > { %v887_v23 = vadd.f32 %v886_v21, %v885_v19  ;;  %v898_v24 = vrot.slane %v897_v22, 2 }
 0x286   : > { %v888_v25 = vrot.slane %v887_v23, 1  ;;  %v899_v26 = vadd.f32 %v898_v24, %v897_v22 }
 0x288   : > { %v889_v28 = vadd.f32 %v888_v25, %v887_v23  ;;  %v900_v29 = vrot.slane %v899_v26, 1 }
 0x28a   : > { %v890_v31 = vadd.f32 %v889_v28, %v882_v27  ;;  %v901_v32 = vadd.f32 %v900_v29, %v899_v26 }
 0x28c   : > { %891 = vst [vmem:[#allocation9] sm:$0x1] %v890_v31  ;;  %v902_v33 = vadd.f32 %v901_v32, %v892_v30 }
 0x28e   : > { %903 = vst [vmem:[#allocation10] sm:$0x1] %v902_v33 }
 0x28f PF: > { %p1216_p5 = scmp.eq.s32.totalorder %s1395_s25, 2 }
 0x291   : > { %907 = sbr.rel (%p1216_p5) target bundleno = 681 (0x2a9), region = 112 }
 0x296   : > { %v909_v34 = vadd.f32 %v861_v11, %v858_v8  ;;  %v919_v35 = vmul.f32 %v858_v8, %v858_v8  ;;  %v920_v36 = vmul.f32 %v861_v11, %v861_v11  ;;  %v908_v47 = vld [vmem:[#allocation9] sm:$0x1]  ;;  %v918_v50 = vld [vmem:[#allocation10] sm:$0x1] }
 0x298   : > { %v910_v37 = vrot.slane %v909_v34, 4  ;;  %v921_v38 = vadd.f32 %v920_v36, %v919_v35 }
 0x29a   : > { %v911_v39 = vadd.f32 %v910_v37, %v909_v34  ;;  %v922_v40 = vrot.slane %v921_v38, 4 }
 0x29c   : > { %v912_v41 = vrot.slane %v911_v39, 2  ;;  %v923_v42 = vadd.f32 %v922_v40, %v921_v38 }
 0x29e   : > { %v913_v43 = vadd.f32 %v912_v41, %v911_v39  ;;  %v924_v44 = vrot.slane %v923_v42, 2 }
 0x2a0   : > { %v914_v45 = vrot.slane %v913_v43, 1  ;;  %v925_v46 = vadd.f32 %v924_v44, %v923_v42 }
 0x2a2   : > { %v915_v48 = vadd.f32 %v914_v45, %v913_v43  ;;  %v926_v49 = vrot.slane %v925_v46, 1 }
 0x2a4   : > { %v916_v51 = vadd.f32 %v915_v48, %v908_v47  ;;  %v927_v52 = vadd.f32 %v926_v49, %v925_v46 }
 0x2a6   : > { %917 = vst [vmem:[#allocation9] sm:$0x1] %v916_v51  ;;  %v928_v53 = vadd.f32 %v927_v52, %v918_v50 }
 0x2a8   : > { %929 = vst [vmem:[#allocation10] sm:$0x1] %v928_v53 }
 0x2a9 PF: > { %p1217_p6 = scmp.ne.s32.totalorder %s1399_s26, 3 }
 0x2aa   : > { %p1218_p7 = scmp.ne.s32.totalorder (!%p1217_p6), %s1395_s25, 0 }
 0x2ab   : > { %933 = sbr.rel (%p1217_p6) target bundleno = 972 (0x3cc), region = 116 }
 0x2b0   : > { %936 = sbr.rel (%p1218_p7) target bundleno = 725 (0x2d5), region = 120 }
 0x2b5   : > { %v937_v54 = vld [vmem:[#allocation9] sm:$0x1]  ;;  %v939_v55 = vld [vmem:[#allocation10] sm:$0x1]  ;;  %v944_v62 = vld [vmem:[%s1660_s9] sm:$0x1] }
 0x2b6   : > { %v938_v56 = vmul.f32 0.025, %v937_v54  ;;  %v940_v57 = vmul.f32 0.025, %v939_v55  ;;  %v949_v1 = vld [vmem:[%s1661_s10] sm:$0x1] }
 0x2b8   : > { %v941_v58 = vmul.f32 %v938_v56, %v938_v56 }
 0x2ba   : > { %v942_v59 = vsub.f32 %v940_v57, %v941_v58 }
 0x2bc   : > { %v943_v60 = vmax.f32 %v942_v59, 0.0 }
 0x2be   : > { %v945_v61 = vadd.f32 1e-05, %v943_v60 }
 0x2c0   : > { %1359 = vrsqrt.f32 %v945_v61 }
 0x2cd   : > { %v1360_v63 = vpop.eup %1359 }
 0x2ce   : > { %v947_v0 = vmul.f32 %v1360_v63, %v944_v62 }
 0x2d0   : > { %948 = vst [vmem:[#allocation9] sm:$0x1] %v947_v0  ;;  %v950_v2 = vmul.f32 %v947_v0, %v938_v56 }
 0x2d2   : > { %v951_v3 = vsub.f32 %v949_v1, %v950_v2 }
 0x2d4   : > { %952 = vst [vmem:[#allocation10] sm:$0x1] %v951_v3 }
 0x2d5 PF: > { %v1361_v4 = vld [vmem:[%s1662_s11 + $0x38] sm:$0xff]   ;;  %v1418_v5 = vmov 0.0   ;;  %v1362_v6 = vld [vmem:[%s1662_s11 + $0x30] sm:$0xff]   ;;  %vm1419_vm7 = vmmov 0   ;;  %v1363_v7 = vld [vmem:[%s1662_s11 + $0x28] sm:$0xff]   ;;  %s1219_s18 = sshll.u32 %s1395_s25, 4 }
 0x2d6   : > { %1279 = vmatprep.subr.bf16.mxu0 %v1418_v5  ;;  %1295 = vmatprep.mubr.msk.bf16.mxu0 %vm1419_vm7, %v1418_v5  ;;  %v1364_v8 = vld [vmem:[%s1662_s11 + $0x20] sm:$0xff]   ;;  %v1365_v9 = vld [vmem:[%s1662_s11 + $0x18] sm:$0xff]   ;;  %s954_s21 = scalar_lea.vmem [#allocation4], %s1219_s18  ;;  %v1366_v15 = vld [vmem:[%s1662_s11 + $0x10] sm:$0xff]  }
 0x2d7   : > { %1280 = vmatpush3.bf16.msra.mxu0 %v1361_v4  ;;  %v955_v10 = vld [vmem:[%s954_s21] sm:$0xff]  ;;  %v956_v11 = vld [vmem:[%s954_s21 + $0x8] sm:$0xff]  ;;  %v1220_v12 = vld [vmem:[#allocation9] ss:$0 sm:$0xff] }
 0x2d8   : > { %1281 = vmatprep.subr.bf16.mxu0 %v1418_v5  ;;  %v964_v13 = vmul.f32 %v1220_v12, %v955_v10  ;;  %v965_v14 = vmul.f32 %v1220_v12, %v956_v11  ;;  %v1367_v19 = vld [vmem:[%s1662_s11 + $0x8] sm:$0xff]   ;;  %v1368_v22 = vld [vmem:[%s1662_s11] sm:$0xff]  }
 0x2d9   : > { %v1222_v24 = vld [vmem:[%s1663_s12] ss:$0 sm:$0xff] }
 0x2db   : > { %1282 = vmatpush3.bf16.msra.mxu0 %v1362_v6  ;;  %v1221_v16 = vld [vmem:[#allocation10] ss:$0 sm:$0xff] }
 0x2dc   : > { %1283 = vmatprep.subr.bf16.mxu0 %v1418_v5  ;;  %v973_v17 = vadd.f32 %v1221_v16, %v964_v13  ;;  %v974_v18 = vadd.f32 %v1221_v16, %v965_v14 }
 0x2de   : > { %v975_v20 = vmax.f32 %v973_v17, 0.0  ;;  %v976_v21 = vmax.f32 %v974_v18, 0.0 }
 0x2df   : > { %1284 = vmatpush3.bf16.msra.mxu0 %v1363_v7 }
 0x2e0   : > { %1285 = vmatprep.subr.bf16.mxu0 %v1418_v5  ;;  %v977_v23 = vpack.c.bf16 %v976_v21, %v975_v20 }
 0x2e3   : > { %1286 = vmatpush3.bf16.msra.mxu0 %v1364_v8 }
 0x2e4   : > { %1287 = vmatprep.subr.bf16.mxu0 %v1418_v5 }
 0x2e7   : > { %1288 = vmatpush3.bf16.msra.mxu0 %v1365_v9 }
 0x2e8   : > { %1289 = vmatprep.subr.bf16.mxu0 %v1418_v5 }
 0x2eb   : > { %1290 = vmatpush3.bf16.msra.mxu0 %v1366_v15 }
 0x2ec   : > { %1291 = vmatprep.subr.bf16.mxu0 %v1418_v5 }
 0x2ef   : > { %1292 = vmatpush3.bf16.msra.mxu0 %v1367_v19 }
 0x2f0   : > { %1293 = vmatprep.subr.bf16.mxu0 %v1418_v5 }
 0x2f3   : > { %1294 = vmatpush3.bf16.msra.mxu0 %v1368_v22 }
 0x2f6   : > { %1296 = vmatmul.mubr.bf16.vlgmr.msra.gmra.mxu0 %v977_v23 }
 0x3b6   : > { %v1083_v25 = vpop.f32.mrf.mxu0 }
 0x3b7   : > { %v1084_v26 = vadd.f32 %v1222_v24, %v1083_v25 }
 0x3b8   : > { %v1297_v27 = vpop.f32.mrf.mxu0 }
 0x3b9   : > { %1369 = vtanh.f32 %v1084_v26 }
 0x3ba   : > { %v1086_v28 = vpop.f32.mrf.mxu0 }
 0x3bb   : > { %v1087_v29 = vadd.f32 %v1222_v24, %v1086_v28 }
 0x3bc   : > { %v1298_v30 = vpop.f32.mrf.mxu0 }
 0x3bd   : > { %1371 = vtanh.f32 %v1087_v29 }
 0x3c6   : > { %v1370_v31 = vpop.eup %1369 }
 0x3c7   : > { %1092 = vst [vmem:[%s1535_s30] sm:$0xff] %v1370_v31 }
 0x3ca   : > { %v1372_v32 = vpop.eup %1371 }
 0x3cb   : > { %1093 = vst [vmem:[%s1535_s30 + $0x8] sm:$0xff] %v1372_v32 }
 0x3cc PF: > { %s23_s29 = sadd.s32 1, %s1411_s29   ;;  %s1667_s19 = sld [smem:[#allocation11_spill]] }
 0x3cd   : > { %p20_p8 = scmp.ge.s32.totalorder %s23_s29, 14   ;;  %s1668_s14 = sld [smem:[#allocation12_spill]] }
 0x3ce   : > { %s1669_s25 = smov %s1403_s27  ;;  %s1670_s26 = smov %s1407_s28 }
 0x3cf   :  { %22 = sbr.rel (!%p20_p8) target bundleno = 3 (0x3), region = 156 }
 0x3d2   : > { %s1671_s27 = smov %s1667_s19 }
 0x3d3   : > { %s1672_s28 = smov %s1668_s14 }

</bundles_post_ra>
